<compile_context>
chip_gen: v5e
topology: v5e:2x2
jax: 0.10.0
libtpu: 0.0.40
codegen_flags: <defaults>
</compile_context>

<pallas_src>
import jax
import jax.numpy as jnp
from jax.experimental import pallas as pl
from jax.experimental.pallas import tpu as pltpu

_HID = 128        # hidden widths 20/10/20 zero-padded to one MXU-friendly width
_OUT_CHUNK = 512  # lane-chunk width for the fc4 compute/store


def _round_up(x, m):
    return (x + m - 1) // m * m


def _min_sublane(dtype):
    """Second-to-last-dim alignment for a streamed block of this dtype."""
    itemsize = jnp.dtype(dtype).itemsize
    if itemsize >= 4:
        return 8
    if itemsize == 2:
        return 16
    return 32


def _sigmoid(z):
    # Mathematically identical to 1/(1+exp(-z)); tanh lives on the EUP slot and
    # avoids an explicit VPU divide.  z is always f32 here.
    return 0.5 * jnp.tanh(0.5 * z) + 0.5


def sae_kernel(x_ref,
               w1_ref, b1_ref,
               w2_ref, b2_ref,
               w3_ref, b3_ref,
               w4_ref, b4_ref,
               o_ref):
    """Fused 4-layer SAE forward on one (tn, F) batch tile."""
    cdt = w1_ref.dtype  # MXU-feed dtype (bfloat16 default, or float32)

    x = x_ref[...].astype(cdt)
    z1 = jnp.dot(x, w1_ref[...], preferred_element_type=jnp.float32) + b1_ref[...]
    h1 = _sigmoid(z1)                                    # f32, (tn, 128)
    z2 = jnp.dot(h1.astype(cdt), w2_ref[...],
                 preferred_element_type=jnp.float32) + b2_ref[...]
    h2 = _sigmoid(z2)
    z3 = jnp.dot(h2.astype(cdt), w3_ref[...],
                 preferred_element_type=jnp.float32) + b3_ref[...]
    h3 = _sigmoid(z3).astype(cdt)

    # fc4: compute + store the wide output in lane chunks so the (tn, F) f32
    # intermediate (and its cast copy) never lives in scratch all at once.
    F = o_ref.shape[1]
    n_chunks = (F + _OUT_CHUNK - 1) // _OUT_CHUNK        # static python int
    for c in range(n_chunks):
        lo = c * _OUT_CHUNK
        hi = min(F, lo + _OUT_CHUNK)
        z4 = jnp.dot(h3, w4_ref[:, lo:hi],
                     preferred_element_type=jnp.float32) + b4_ref[:, lo:hi]
        o_ref[:, lo:hi] = z4.astype(o_ref.dtype)


def prepare_params(params, compute_dtype=jnp.bfloat16):
    """One-time glue (at param-load time, not per forward call): transpose
    PyTorch (out,in) weights to (in,out), zero-pad the tiny hidden dims to 128,
    cast weights to the streaming/compute dtype.  Biases stay f32.  The feature
    dim F is NOT padded — blocks use the full array extent."""
    F = params["w1"].shape[1]

    def pad_to(a, shape):
        buf = jnp.zeros(shape, a.dtype)
        return buf.at[tuple(slice(0, s) for s in a.shape)].set(a)

    return {
        "F": F,
        "w1": pad_to(params["w1"].T, (F, _HID)).astype(compute_dtype),
        "w2": pad_to(params["w2"].T, (_HID, _HID)).astype(compute_dtype),
        "w3": pad_to(params["w3"].T, (_HID, _HID)).astype(compute_dtype),
        "w4": pad_to(params["w4"].T, (_HID, F)).astype(compute_dtype),
        "b1": pad_to(params["b1"].reshape(1, -1), (1, _HID)).astype(jnp.float32),
        "b2": pad_to(params["b2"].reshape(1, -1), (1, _HID)).astype(jnp.float32),
        "b3": pad_to(params["b3"].reshape(1, -1), (1, _HID)).astype(jnp.float32),
        "b4": pad_to(params["b4"].reshape(1, -1), (1, F)).astype(jnp.float32),
    }


def sae_forward(x, prepared, *, tile_rows=1024, out_dtype=None,
                single_buffer_weights=True, core_parallel=False):
    """x: (N, nb_movies).  prepared: output of prepare_params().

    tile_rows: batch tile.  1024 is a good default for v5e/v6e (128 MiB VMEM);
    for an f32 path with very large F on v7x (64 MiB VMEM) use 256-512.
    core_parallel: set True on v7x to shard the batch grid across both TCs.
    """
    N, F = x.shape
    assert F == prepared["F"], "x feature dim must match prepared params"
    cdt = prepared["w1"].dtype
    if out_dtype is None:
        out_dtype = cdt

    # Batch tile: multiple of the sublane packing of the streamed dtypes
    # (16 for bf16, 8 for f32).  The last grid block may be ragged; Pallas
    # masks its out-of-bounds rows (rows are independent, so this is exact).
    sub = max(_min_sublane(x.dtype), _min_sublane(out_dtype))
    tn = min(_round_up(tile_rows, sub), _round_up(N, sub))
    grid = (pl.cdiv(N, tn),)

    def stream_spec(shape):
        return pl.BlockSpec(shape, lambda i: (i, 0))

    def resident_spec(shape, single):
        # Constant index map -> fetched once, VMEM-resident for the whole grid.
        if single:
            return pl.BlockSpec(shape, lambda i: (0, 0),
                                pipeline_mode=pl.Buffered(1))
        return pl.BlockSpec(shape, lambda i: (0, 0))

    def build(single):
        in_specs = [
            stream_spec((tn, F)),                       # x tile streams over batch
            resident_spec((F, _HID), single),           # w1
            resident_spec((1, _HID), single),           # b1
            resident_spec((_HID, _HID), single),        # w2
            resident_spec((1, _HID), single),           # b2
            resident_spec((_HID, _HID), single),        # w3
            resident_spec((1, _HID), single),           # b3
            resident_spec((_HID, F), single),           # w4
            resident_spec((1, F), single),              # b4
        ]
        sems = (pltpu.CORE_PARALLEL,) if core_parallel else ("parallel",)
        return pl.pallas_call(
            sae_kernel,
            out_shape=jax.ShapeDtypeStruct((N, F), out_dtype),
            grid=grid,
            in_specs=in_specs,
            out_specs=stream_spec((tn, F)),
            compiler_params=pltpu.CompilerParams(
                dimension_semantics=sems,
                vmem_limit_bytes=56 * 1024 * 1024,   # < v7x's 64 MiB physical
            ),
        )

    args = (x, prepared["w1"], prepared["b1"], prepared["w2"], prepared["b2"],
            prepared["w3"], prepared["b3"], prepared["w4"], prepared["b4"])

    if single_buffer_weights:
        try:
            return build(True)(*args)
        except Exception:
            # Older JAX without Buffered(1) support: fall back to the default
            # double-buffered resident weights (a few hundred KiB of extra VMEM).
            pass
    return build(False)(*args)


def init_params(key, nb_movies):
    """Deterministic init mimicking PyTorch nn.Linear default (uniform +-1/sqrt(fan_in))."""
    dims = [(20, nb_movies), (10, 20), (20, 10), (nb_movies, 20)]
    params = {}
    for idx, (out_f, in_f) in enumerate(dims, start=1):
        key, kw, kb = jax.random.split(key, 3)
        bound = 1.0 / jnp.sqrt(in_f)
        params[f"w{idx}"] = jax.random.uniform(
            kw, (out_f, in_f), jnp.float32, -bound, bound)
        params[f"b{idx}"] = jax.random.uniform(
            kb, (out_f,), jnp.float32, -bound, bound)
    return params


def sae_reference(x, params):
    """Pure-JAX reference of the PyTorch forward, for correctness checks."""
    h = jax.nn.sigmoid(x @ params["w1"].T + params["b1"])
    h = jax.nn.sigmoid(h @ params["w2"].T + params["b2"])
    h = jax.nn.sigmoid(h @ params["w3"].T + params["b3"])
    return h @ params["w4"].T + params["b4"]


if __name__ == "__main__":
    # Small demo: nb_movies deliberately not a multiple of 128 and batch not a
    # multiple of the tile, to exercise the masked ragged last block and the
    # unpadded full-extent feature dim.
    nb_movies = 200
    batch = 40

    key = jax.random.PRNGKey(0)
    key, kx = jax.random.split(key)
    params = init_params(key, nb_movies)

    # Ratings-style input: non-negative, mostly small values.
    x = jax.random.uniform(kx, (batch, nb_movies), jnp.float32, 0.0, 5.0)

    ref = sae_reference(x, params)

    # float32 path — tight correctness check; small tile so the demo runs a
    # multi-step grid with a ragged final block (40 rows, tn=16 -> 3 steps).
    prep_f32 = prepare_params(params, compute_dtype=jnp.float32)
    out_f32 = jax.block_until_ready(sae_forward(x, prep_f32, tile_rows=16))
    assert out_f32.shape == (batch, nb_movies)
    assert out_f32.dtype == jnp.float32
    assert jnp.allclose(out_f32, ref, atol=1e-4, rtol=1e-4)

    # bfloat16 streaming path (the default) — halves the dominant HBM streams
    # (weights + output); f32 MXU accumulation and f32 sigmoid/bias math.
    # tn=32 (multiple of 16 for bf16 packing), 2 grid steps, ragged last block.
    prep_bf16 = prepare_params(params)                     # bf16 default
    out_bf16 = jax.block_until_ready(sae_forward(x, prep_bf16, tile_rows=32))
    assert out_bf16.shape == (batch, nb_movies)
    assert out_bf16.dtype == jnp.bfloat16
    assert jnp.allclose(out_bf16.astype(jnp.float32), ref, atol=1e-1, rtol=1e-1)

    print("KERNEL_OK")
</pallas_src>

<mosaic_0001>
module attributes {stable_mosaic.version = 11 : i64} {
  func.func @sae_kernel(%arg0: i32, %arg1: memref<16x200xf32, #tpu.memory_space<vmem>>, %arg2: memref<200x128xf32, #tpu.memory_space<vmem>>, %arg3: memref<1x128xf32, #tpu.memory_space<vmem>>, %arg4: memref<128x128xf32, #tpu.memory_space<vmem>>, %arg5: memref<1x128xf32, #tpu.memory_space<vmem>>, %arg6: memref<128x128xf32, #tpu.memory_space<vmem>>, %arg7: memref<1x128xf32, #tpu.memory_space<vmem>>, %arg8: memref<128x200xf32, #tpu.memory_space<vmem>>, %arg9: memref<1x200xf32, #tpu.memory_space<vmem>>, %arg10: memref<16x200xf32, #tpu.memory_space<vmem>>) attributes {dimension_semantics = [#tpu.dimension_semantics<parallel>], iteration_bounds = array<i64: 3>, scalar_prefetch = 0 : i64, scratch_operands = 0 : i64, tpu.core_type = #tpu.core_type<tc>, window_params = [{transform_indices = @transform_0, window_bounds = array<i64: 16, 200>}, {pipeline_mode = #tpu.pipeline_mode<synchronous>, transform_indices = @transform_1, window_bounds = array<i64: 200, 128>}, {pipeline_mode = #tpu.pipeline_mode<synchronous>, transform_indices = @transform_2, window_bounds = array<i64: 1, 128>}, {pipeline_mode = #tpu.pipeline_mode<synchronous>, transform_indices = @transform_3, window_bounds = array<i64: 128, 128>}, {pipeline_mode = #tpu.pipeline_mode<synchronous>, transform_indices = @transform_4, window_bounds = array<i64: 1, 128>}, {pipeline_mode = #tpu.pipeline_mode<synchronous>, transform_indices = @transform_5, window_bounds = array<i64: 128, 128>}, {pipeline_mode = #tpu.pipeline_mode<synchronous>, transform_indices = @transform_6, window_bounds = array<i64: 1, 128>}, {pipeline_mode = #tpu.pipeline_mode<synchronous>, transform_indices = @transform_7, window_bounds = array<i64: 128, 200>}, {pipeline_mode = #tpu.pipeline_mode<synchronous>, transform_indices = @transform_8, window_bounds = array<i64: 1, 200>}, {transform_indices = @transform_9, window_bounds = array<i64: 16, 200>}]} {
    %c0 = arith.constant 0 : index
    %c0_0 = arith.constant 0 : index
    %0 = vector.load %arg1[%c0, %c0_0] : memref<16x200xf32, #tpu.memory_space<vmem>>, vector<16x200xf32>
    %c0_1 = arith.constant 0 : index
    %c0_2 = arith.constant 0 : index
    %1 = vector.load %arg2[%c0_1, %c0_2] : memref<200x128xf32, #tpu.memory_space<vmem>>, vector<200x128xf32>
    %cst = arith.constant dense<0.000000e+00> : vector<16x128xf32>
    %2 = tpu.matmul %0, %1, %cst {dimension_numbers = #tpu.dot_dimension_numbers<[1], [0], [0], [1], [0, 0, 1, 1], [], []>} : vector<16x200xf32>, vector<200x128xf32>, vector<16x128xf32> -> vector<16x128xf32>
    %c0_3 = arith.constant 0 : index
    %c0_4 = arith.constant 0 : index
    %3 = vector.load %arg3[%c0_3, %c0_4] : memref<1x128xf32, #tpu.memory_space<vmem>>, vector<1x128xf32>
    %4 = vector.broadcast %3 : vector<1x128xf32> to vector<16x128xf32>
    %5 = arith.addf %2, %4 : vector<16x128xf32>
    %cst_5 = arith.constant 5.000000e-01 : f32
    %6 = vector.broadcast %cst_5 : f32 to vector<16x128xf32>
    %7 = arith.mulf %6, %5 : vector<16x128xf32>
    %8 = math.tanh %7 : vector<16x128xf32>
    %cst_6 = arith.constant 5.000000e-01 : f32
    %9 = vector.broadcast %cst_6 : f32 to vector<16x128xf32>
    %10 = arith.mulf %9, %8 : vector<16x128xf32>
    %cst_7 = arith.constant 5.000000e-01 : f32
    %11 = vector.broadcast %cst_7 : f32 to vector<16x128xf32>
    %12 = arith.addf %10, %11 : vector<16x128xf32>
    %c0_8 = arith.constant 0 : index
    %c0_9 = arith.constant 0 : index
    %13 = vector.load %arg4[%c0_8, %c0_9] : memref<128x128xf32, #tpu.memory_space<vmem>>, vector<128x128xf32>
    %cst_10 = arith.constant dense<0.000000e+00> : vector<16x128xf32>
    %14 = tpu.matmul %12, %13, %cst_10 {dimension_numbers = #tpu.dot_dimension_numbers<[1], [0], [0], [1], [0, 0, 1, 1], [], []>} : vector<16x128xf32>, vector<128x128xf32>, vector<16x128xf32> -> vector<16x128xf32>
    %c0_11 = arith.constant 0 : index
    %c0_12 = arith.constant 0 : index
    %15 = vector.load %arg5[%c0_11, %c0_12] : memref<1x128xf32, #tpu.memory_space<vmem>>, vector<1x128xf32>
    %16 = vector.broadcast %15 : vector<1x128xf32> to vector<16x128xf32>
    %17 = arith.addf %14, %16 : vector<16x128xf32>
    %cst_13 = arith.constant 5.000000e-01 : f32
    %18 = vector.broadcast %cst_13 : f32 to vector<16x128xf32>
    %19 = arith.mulf %18, %17 : vector<16x128xf32>
    %20 = math.tanh %19 : vector<16x128xf32>
    %cst_14 = arith.constant 5.000000e-01 : f32
    %21 = vector.broadcast %cst_14 : f32 to vector<16x128xf32>
    %22 = arith.mulf %21, %20 : vector<16x128xf32>
    %cst_15 = arith.constant 5.000000e-01 : f32
    %23 = vector.broadcast %cst_15 : f32 to vector<16x128xf32>
    %24 = arith.addf %22, %23 : vector<16x128xf32>
    %c0_16 = arith.constant 0 : index
    %c0_17 = arith.constant 0 : index
    %25 = vector.load %arg6[%c0_16, %c0_17] : memref<128x128xf32, #tpu.memory_space<vmem>>, vector<128x128xf32>
    %cst_18 = arith.constant dense<0.000000e+00> : vector<16x128xf32>
    %26 = tpu.matmul %24, %25, %cst_18 {dimension_numbers = #tpu.dot_dimension_numbers<[1], [0], [0], [1], [0, 0, 1, 1], [], []>} : vector<16x128xf32>, vector<128x128xf32>, vector<16x128xf32> -> vector<16x128xf32>
    %c0_19 = arith.constant 0 : index
    %c0_20 = arith.constant 0 : index
    %27 = vector.load %arg7[%c0_19, %c0_20] : memref<1x128xf32, #tpu.memory_space<vmem>>, vector<1x128xf32>
    %28 = vector.broadcast %27 : vector<1x128xf32> to vector<16x128xf32>
    %29 = arith.addf %26, %28 : vector<16x128xf32>
    %cst_21 = arith.constant 5.000000e-01 : f32
    %30 = vector.broadcast %cst_21 : f32 to vector<16x128xf32>
    %31 = arith.mulf %30, %29 : vector<16x128xf32>
    %32 = math.tanh %31 : vector<16x128xf32>
    %cst_22 = arith.constant 5.000000e-01 : f32
    %33 = vector.broadcast %cst_22 : f32 to vector<16x128xf32>
    %34 = arith.mulf %33, %32 : vector<16x128xf32>
    %cst_23 = arith.constant 5.000000e-01 : f32
    %35 = vector.broadcast %cst_23 : f32 to vector<16x128xf32>
    %36 = arith.addf %34, %35 : vector<16x128xf32>
    %c0_24 = arith.constant 0 : index
    %c0_25 = arith.constant 0 : index
    %37 = vector.load %arg8[%c0_24, %c0_25] : memref<128x200xf32, #tpu.memory_space<vmem>>, vector<128x200xf32>
    %cst_26 = arith.constant dense<0.000000e+00> : vector<16x200xf32>
    %38 = tpu.matmul %36, %37, %cst_26 {dimension_numbers = #tpu.dot_dimension_numbers<[1], [0], [0], [1], [0, 0, 1, 1], [], []>} : vector<16x128xf32>, vector<128x200xf32>, vector<16x200xf32> -> vector<16x200xf32>
    %c0_27 = arith.constant 0 : index
    %c0_28 = arith.constant 0 : index
    %39 = vector.load %arg9[%c0_27, %c0_28] : memref<1x200xf32, #tpu.memory_space<vmem>>, vector<1x200xf32>
    %40 = vector.broadcast %39 : vector<1x200xf32> to vector<16x200xf32>
    %41 = arith.addf %38, %40 : vector<16x200xf32>
    %c0_29 = arith.constant 0 : index
    %c0_30 = arith.constant 0 : index
    %42 = vector.load %arg10[%c0_29, %c0_30] : memref<16x200xf32, #tpu.memory_space<vmem>>, vector<16x200xf32>
    tpu.vector_store %arg10[%c0_29, %c0_30], %41 {strides = array<i32>} : memref<16x200xf32, #tpu.memory_space<vmem>>, vector<16x200xf32>,
    return
  }
  func.func @transform_0(%arg0: i32) -> (i32, i32) {
    %c0_i32 = arith.constant 0 : i32
    %c0_i32_0 = arith.constant 0 : i32
    return %arg0, %c0_i32 : i32, i32
  }
  func.func @transform_1(%arg0: i32) -> (i32, i32) {
    %c0_i32 = arith.constant 0 : i32
    %c0_i32_0 = arith.constant 0 : i32
    %c0_i32_1 = arith.constant 0 : i32
    return %c0_i32, %c0_i32_0 : i32, i32
  }
  func.func @transform_2(%arg0: i32) -> (i32, i32) {
    %c0_i32 = arith.constant 0 : i32
    %c0_i32_0 = arith.constant 0 : i32
    %c0_i32_1 = arith.constant 0 : i32
    return %c0_i32, %c0_i32_0 : i32, i32
  }
  func.func @transform_3(%arg0: i32) -> (i32, i32) {
    %c0_i32 = arith.constant 0 : i32
    %c0_i32_0 = arith.constant 0 : i32
    %c0_i32_1 = arith.constant 0 : i32
    return %c0_i32, %c0_i32_0 : i32, i32
  }
  func.func @transform_4(%arg0: i32) -> (i32, i32) {
    %c0_i32 = arith.constant 0 : i32
    %c0_i32_0 = arith.constant 0 : i32
    %c0_i32_1 = arith.constant 0 : i32
    return %c0_i32, %c0_i32_0 : i32, i32
  }
  func.func @transform_5(%arg0: i32) -> (i32, i32) {
    %c0_i32 = arith.constant 0 : i32
    %c0_i32_0 = arith.constant 0 : i32
    %c0_i32_1 = arith.constant 0 : i32
    return %c0_i32, %c0_i32_0 : i32, i32
  }
  func.func @transform_6(%arg0: i32) -> (i32, i32) {
    %c0_i32 = arith.constant 0 : i32
    %c0_i32_0 = arith.constant 0 : i32
    %c0_i32_1 = arith.constant 0 : i32
    return %c0_i32, %c0_i32_0 : i32, i32
  }
  func.func @transform_7(%arg0: i32) -> (i32, i32) {
    %c0_i32 = arith.constant 0 : i32
    %c0_i32_0 = arith.constant 0 : i32
    %c0_i32_1 = arith.constant 0 : i32
    return %c0_i32, %c0_i32_0 : i32, i32
  }
  func.func @transform_8(%arg0: i32) -> (i32, i32) {
    %c0_i32 = arith.constant 0 : i32
    %c0_i32_0 = arith.constant 0 : i32
    %c0_i32_1 = arith.constant 0 : i32
    return %c0_i32, %c0_i32_0 : i32, i32
  }
  func.func @transform_9(%arg0: i32) -> (i32, i32) {
    %c0_i32 = arith.constant 0 : i32
    %c0_i32_0 = arith.constant 0 : i32
    return %arg0, %c0_i32 : i32, i32
  }
}

module attributes {stable_mosaic.version = 11 : i64} {
  func.func @sae_kernel(%arg0: i32, %arg1: memref<16x200xf32, #tpu.memory_space<vmem>>, %arg2: memref<200x128xf32, #tpu.memory_space<vmem>>, %arg3: memref<1x128xf32, #tpu.memory_space<vmem>>, %arg4: memref<128x128xf32, #tpu.memory_space<vmem>>, %arg5: memref<1x128xf32, #tpu.memory_space<vmem>>, %arg6: memref<128x128xf32, #tpu.memory_space<vmem>>, %arg7: memref<1x128xf32, #tpu.memory_space<vmem>>, %arg8: memref<128x200xf32, #tpu.memory_space<vmem>>, %arg9: memref<1x200xf32, #tpu.memory_space<vmem>>, %arg10: memref<16x200xf32, #tpu.memory_space<vmem>>) attributes {dimension_semantics = [#tpu.dimension_semantics<parallel>], iteration_bounds = array<i64: 3>, scalar_prefetch = 0 : i64, scratch_operands = 0 : i64, tpu.core_type = #tpu.core_type<tc>, window_params = [{transform_indices = @transform_0, window_bounds = array<i64: 16, 200>}, {pipeline_mode = #tpu.pipeline_mode<synchronous>, transform_indices = @transform_1, window_bounds = array<i64: 200, 128>}, {pipeline_mode = #tpu.pipeline_mode<synchronous>, transform_indices = @transform_2, window_bounds = array<i64: 1, 128>}, {pipeline_mode = #tpu.pipeline_mode<synchronous>, transform_indices = @transform_3, window_bounds = array<i64: 128, 128>}, {pipeline_mode = #tpu.pipeline_mode<synchronous>, transform_indices = @transform_4, window_bounds = array<i64: 1, 128>}, {pipeline_mode = #tpu.pipeline_mode<synchronous>, transform_indices = @transform_5, window_bounds = array<i64: 128, 128>}, {pipeline_mode = #tpu.pipeline_mode<synchronous>, transform_indices = @transform_6, window_bounds = array<i64: 1, 128>}, {pipeline_mode = #tpu.pipeline_mode<synchronous>, transform_indices = @transform_7, window_bounds = array<i64: 128, 200>}, {pipeline_mode = #tpu.pipeline_mode<synchronous>, transform_indices = @transform_8, window_bounds = array<i64: 1, 200>}, {transform_indices = @transform_9, window_bounds = array<i64: 16, 200>}]} {
    %c0 = arith.constant 0 : index
    %c0_0 = arith.constant 0 : index
    %0 = vector.load %arg1[%c0, %c0_0] : memref<16x200xf32, #tpu.memory_space<vmem>>, vector<16x200xf32>
    %c0_1 = arith.constant 0 : index
    %c0_2 = arith.constant 0 : index
    %1 = vector.load %arg2[%c0_1, %c0_2] : memref<200x128xf32, #tpu.memory_space<vmem>>, vector<200x128xf32>
    %cst = arith.constant dense<0.000000e+00> : vector<16x128xf32>
    %2 = tpu.matmul %0, %1, %cst {dimension_numbers = #tpu.dot_dimension_numbers<[1], [0], [0], [1], [0, 0, 1, 1], [], []>} : vector<16x200xf32>, vector<200x128xf32>, vector<16x128xf32> -> vector<16x128xf32>
    %c0_3 = arith.constant 0 : index
    %c0_4 = arith.constant 0 : index
    %3 = vector.load %arg3[%c0_3, %c0_4] : memref<1x128xf32, #tpu.memory_space<vmem>>, vector<1x128xf32>
    %4 = vector.broadcast %3 : vector<1x128xf32> to vector<16x128xf32>
    %5 = arith.addf %2, %4 : vector<16x128xf32>
    %cst_5 = arith.constant 5.000000e-01 : f32
    %6 = vector.broadcast %cst_5 : f32 to vector<16x128xf32>
    %7 = arith.mulf %6, %5 : vector<16x128xf32>
    %8 = math.tanh %7 : vector<16x128xf32>
    %cst_6 = arith.constant 5.000000e-01 : f32
    %9 = vector.broadcast %cst_6 : f32 to vector<16x128xf32>
    %10 = arith.mulf %9, %8 : vector<16x128xf32>
    %cst_7 = arith.constant 5.000000e-01 : f32
    %11 = vector.broadcast %cst_7 : f32 to vector<16x128xf32>
    %12 = arith.addf %10, %11 : vector<16x128xf32>
    %c0_8 = arith.constant 0 : index
    %c0_9 = arith.constant 0 : index
    %13 = vector.load %arg4[%c0_8, %c0_9] : memref<128x128xf32, #tpu.memory_space<vmem>>, vector<128x128xf32>
    %cst_10 = arith.constant dense<0.000000e+00> : vector<16x128xf32>
    %14 = tpu.matmul %12, %13, %cst_10 {dimension_numbers = #tpu.dot_dimension_numbers<[1], [0], [0], [1], [0, 0, 1, 1], [], []>} : vector<16x128xf32>, vector<128x128xf32>, vector<16x128xf32> -> vector<16x128xf32>
    %c0_11 = arith.constant 0 : index
    %c0_12 = arith.constant 0 : index
    %15 = vector.load %arg5[%c0_11, %c0_12] : memref<1x128xf32, #tpu.memory_space<vmem>>, vector<1x128xf32>
    %16 = vector.broadcast %15 : vector<1x128xf32> to vector<16x128xf32>
    %17 = arith.addf %14, %16 : vector<16x128xf32>
    %cst_13 = arith.constant 5.000000e-01 : f32
    %18 = vector.broadcast %cst_13 : f32 to vector<16x128xf32>
    %19 = arith.mulf %18, %17 : vector<16x128xf32>
    %20 = math.tanh %19 : vector<16x128xf32>
    %cst_14 = arith.constant 5.000000e-01 : f32
    %21 = vector.broadcast %cst_14 : f32 to vector<16x128xf32>
    %22 = arith.mulf %21, %20 : vector<16x128xf32>
    %cst_15 = arith.constant 5.000000e-01 : f32
    %23 = vector.broadcast %cst_15 : f32 to vector<16x128xf32>
    %24 = arith.addf %22, %23 : vector<16x128xf32>
    %c0_16 = arith.constant 0 : index
    %c0_17 = arith.constant 0 : index
    %25 = vector.load %arg6[%c0_16, %c0_17] : memref<128x128xf32, #tpu.memory_space<vmem>>, vector<128x128xf32>
    %cst_18 = arith.constant dense<0.000000e+00> : vector<16x128xf32>
    %26 = tpu.matmul %24, %25, %cst_18 {dimension_numbers = #tpu.dot_dimension_numbers<[1], [0], [0], [1], [0, 0, 1, 1], [], []>} : vector<16x128xf32>, vector<128x128xf32>, vector<16x128xf32> -> vector<16x128xf32>
    %c0_19 = arith.constant 0 : index
    %c0_20 = arith.constant 0 : index
    %27 = vector.load %arg7[%c0_19, %c0_20] : memref<1x128xf32, #tpu.memory_space<vmem>>, vector<1x128xf32>
    %28 = vector.broadcast %27 : vector<1x128xf32> to vector<16x128xf32>
    %29 = arith.addf %26, %28 : vector<16x128xf32>
    %cst_21 = arith.constant 5.000000e-01 : f32
    %30 = vector.broadcast %cst_21 : f32 to vector<16x128xf32>
    %31 = arith.mulf %30, %29 : vector<16x128xf32>
    %32 = math.tanh %31 : vector<16x128xf32>
    %cst_22 = arith.constant 5.000000e-01 : f32
    %33 = vector.broadcast %cst_22 : f32 to vector<16x128xf32>
    %34 = arith.mulf %33, %32 : vector<16x128xf32>
    %cst_23 = arith.constant 5.000000e-01 : f32
    %35 = vector.broadcast %cst_23 : f32 to vector<16x128xf32>
    %36 = arith.addf %34, %35 : vector<16x128xf32>
    %c0_24 = arith.constant 0 : index
    %c0_25 = arith.constant 0 : index
    %37 = vector.load %arg8[%c0_24, %c0_25] : memref<128x200xf32, #tpu.memory_space<vmem>>, vector<128x200xf32>
    %cst_26 = arith.constant dense<0.000000e+00> : vector<16x200xf32>
    %38 = tpu.matmul %36, %37, %cst_26 {dimension_numbers = #tpu.dot_dimension_numbers<[1], [0], [0], [1], [0, 0, 1, 1], [], []>} : vector<16x128xf32>, vector<128x200xf32>, vector<16x200xf32> -> vector<16x200xf32>
    %c0_27 = arith.constant 0 : index
    %c0_28 = arith.constant 0 : index
    %39 = vector.load %arg9[%c0_27, %c0_28] : memref<1x200xf32, #tpu.memory_space<vmem>>, vector<1x200xf32>
    %40 = vector.broadcast %39 : vector<1x200xf32> to vector<16x200xf32>
    %41 = arith.addf %38, %40 : vector<16x200xf32>
    %c0_29 = arith.constant 0 : index
    %c0_30 = arith.constant 0 : index
    %42 = vector.load %arg10[%c0_29, %c0_30] : memref<16x200xf32, #tpu.memory_space<vmem>>, vector<16x200xf32>
    tpu.vector_store %arg10[%c0_29, %c0_30], %41 {strides = array<i32>} : memref<16x200xf32, #tpu.memory_space<vmem>>, vector<16x200xf32>,
    return
  }
  func.func @transform_0(%arg0: i32) -> (i32, i32) {
    %c0_i32 = arith.constant 0 : i32
    %c0_i32_0 = arith.constant 0 : i32
    return %arg0, %c0_i32 : i32, i32
  }
  func.func @transform_1(%arg0: i32) -> (i32, i32) {
    %c0_i32 = arith.constant 0 : i32
    %c0_i32_0 = arith.constant 0 : i32
    %c0_i32_1 = arith.constant 0 : i32
    return %c0_i32, %c0_i32_0 : i32, i32
  }
  func.func @transform_2(%arg0: i32) -> (i32, i32) {
    %c0_i32 = arith.constant 0 : i32
    %c0_i32_0 = arith.constant 0 : i32
    %c0_i32_1 = arith.constant 0 : i32
    return %c0_i32, %c0_i32_0 : i32, i32
  }
  func.func @transform_3(%arg0: i32) -> (i32, i32) {
    %c0_i32 = arith.constant 0 : i32
    %c0_i32_0 = arith.constant 0 : i32
    %c0_i32_1 = arith.constant 0 : i32
    return %c0_i32, %c0_i32_0 : i32, i32
  }
  func.func @transform_4(%arg0: i32) -> (i32, i32) {
    %c0_i32 = arith.constant 0 : i32
    %c0_i32_0 = arith.constant 0 : i32
    %c0_i32_1 = arith.constant 0 : i32
    return %c0_i32, %c0_i32_0 : i32, i32
  }
  func.func @transform_5(%arg0: i32) -> (i32, i32) {
    %c0_i32 = arith.constant 0 : i32
    %c0_i32_0 = arith.constant 0 : i32
    %c0_i32_1 = arith.constant 0 : i32
    return %c0_i32, %c0_i32_0 : i32, i32
  }
  func.func @transform_6(%arg0: i32) -> (i32, i32) {
    %c0_i32 = arith.constant 0 : i32
    %c0_i32_0 = arith.constant 0 : i32
    %c0_i32_1 = arith.constant 0 : i32
    return %c0_i32, %c0_i32_0 : i32, i32
  }
  func.func @transform_7(%arg0: i32) -> (i32, i32) {
    %c0_i32 = arith.constant 0 : i32
    %c0_i32_0 = arith.constant 0 : i32
    %c0_i32_1 = arith.constant 0 : i32
    return %c0_i32, %c0_i32_0 : i32, i32
  }
  func.func @transform_8(%arg0: i32) -> (i32, i32) {
    %c0_i32 = arith.constant 0 : i32
    %c0_i32_0 = arith.constant 0 : i32
    %c0_i32_1 = arith.constant 0 : i32
    return %c0_i32, %c0_i32_0 : i32, i32
  }
  func.func @transform_9(%arg0: i32) -> (i32, i32) {
    %c0_i32 = arith.constant 0 : i32
    %c0_i32_0 = arith.constant 0 : i32
    return %arg0, %c0_i32 : i32, i32
  }
}

</mosaic_0001>

<bundles_post_ra>
// kernel: tpu_custom_call.1
= control target key start
LH: loop header
LB: loop body
LE: loop exit
PB: predicated region body
PF: predicated region fallthrough
CT: control target
= control target key end

     0   :  { %s1662_s0 = inlined_call_operand.hbm [shape: f32[40,200], index: 0, kind: input, shape index: {}]   ;;  %s1663_s1 = inlined_call_operand.vmem [shape: f32[200,128], index: 1, kind: input, shape index: {}]   ;;  %s1664_s2 = inlined_call_operand.hbm [shape: f32[1,128], index: 2, kind: input, shape index: {}]   ;;  %s1665_s3 = inlined_call_operand.vmem [shape: f32[128,128], index: 3, kind: input, shape index: {}]   ;;  %s1666_s4 = inlined_call_operand.hbm [shape: f32[1,128], index: 4, kind: input, shape index: {}]   ;;  %s1667_s5 = inlined_call_operand.vmem [shape: f32[128,128], index: 5, kind: input, shape index: {}]   ;;  %s1668_s6 = inlined_call_operand.vmem [shape: f32[1,128], index: 6, kind: input, shape index: {}]   ;;  %s1669_s7 = inlined_call_operand.vmem [shape: f32[128,200], index: 7, kind: input, shape index: {}]   ;;  %s1670_s8 = inlined_call_operand.vmem [shape: f32[1,200], index: 8, kind: input, shape index: {}]   ;;  %s1671_s9 = inlined_call_operand.hbm [shape: f32[40,200], index: 9, kind: output, shape index: {}]  }
   0x1   :  { %1677 = sst [smem:[#allocation15_spill]] %s1664_s2 }
   0x2   :  { %1678 = sst [smem:[#allocation16_spill]] %s1666_s4 }
   0x3   :  { %14 = vsyncpa [#allocation3], 0 }
   0x4   :  { %16 = vsyncpa [#allocation3 + $0x1], 0 }
   0x5   :  { %17 = vsyncpa [#allocation6], 0 }
   0x6   :  { %18 = vsyncpa [#allocation4], 0 }
   0x7   :  { %20 = vsyncpa [#allocation4 + $0x1], 0  ;;  %s1177_s30 = smov 0   ;;  %s1179_s10 = smov 0  }
   0x8   :  { %s1181_s11 = smov 0   ;;  %s1183_s12 = smov 0  }
   0x9 LB: > { %1679 = sst [smem:[#allocation12_spill]] %s1113_s11  ;;  %s1198_s13 = sadd.s32 4294967295, %s1117_s12   ;;  %s1117_s12 = sphi %s1183_s12, %s1695_s12   ;;  %s1113_s11 = sphi %s1181_s11, %s1697_s11   ;;  %s1109_s10 = sphi %s1179_s10, %s1699_s10   ;;  %s1105_s30 = sphi %s1177_s30, %s1698_s30  }
   0xa   : > { %s804_s14 = sadd.s32 4294967294, %s1117_s12   ;;  %s1202_s15 = sadd.s32 1, %s1117_s12  }
   0xb   : > { %1680 = sst [smem:[#allocation13_spill]] %s1202_s15  ;;  %s33_s16 = sadd.s32 1, %s1113_s11 }
   0xc   : > { %s30_s17 = ssub.s32 %s1117_s12, %s1202_s15  ;;  %p40_p0 = scmp.ne.s32.totalorder %s1113_s11, %s1109_s10 }
   0xd   : > { %p31_p1 = scmp.eq.s32.totalorder %s30_s17, 0  ;;  %p41_p2 = scmp.eq.s32.totalorder %s1117_s12, 0 }
   0xe   : > { %p46_p3 = scmp.ne.s32.totalorder %s1109_s10, %s1105_s30  ;;  %p1676_p4 = scmp.eq.s32.totalorder %s1198_s13, 0 }
   0xf   : > { %s1214_s18 = scalar_select %p31_p1, %s1113_s11, %s33_s16  }
  0x10   : > { %p1216_p5 = por %p41_p2, %p40_p0  ;;  %p1222_p6 = por %p1676_p4, %p46_p3 }
  0x11   : > { %1681 = sst [smem:[#allocation14_spill]] %s1214_s18  ;;  %p238_p7 = scmp.eq.s32.totalorder %s1198_s13, 2 }
  0x12   : > { %p244_p8 = scmp.eq.s32.totalorder %s804_s14, 2  ;;  %p805_p9 = scmp.ge.s32.totalorder %s1117_s12, 1 }
  0x13   : > { %p251_p10 = scmp.lt.s32.totalorder %s1117_s12, 4  ;;  %p1229_p11 = por %p238_p7, %p40_p0 }
  0x14   : > { %p1233_p12 = por %p244_p8, %p46_p3  ;;  %s1687_s2 = sld [smem:[#allocation15_spill]] }
  0x15   : > { %p1237_p13 = pnand %p805_p9, %p251_p10  ;;  %s1119_s27 = smov [#allocation5]  }
  0x16   : > { %s1685_s22 = scalar_select %p1233_p12, 1, 0 }
  0x17   : > { %p868_p1 = pneg %p1237_p13  ;;  %s268_s28 = sshll.u32 %s1119_s27, 4  ;;  %s269_s28 = int_to_ptr.vmem [resolvable:$true] %s268_s28 }
  0x18   : > { %s1688_s4 = sld [smem:[#allocation16_spill]]  ;;  %s1120_s17 = smov [#allocation7]  }
  0x19   : > { %p869_p0 = pnand %p868_p1, %p1676_p4  ;;  %s283_s18 = sshll.u32 %s1120_s17, 4  ;;  %s284_s18 = int_to_ptr.vmem [resolvable:$true] %s283_s18 }
  0x1a   : > { %s266_s26 = sshll.u32 %s1687_s2, 4  ;;  %p808_p2 = scmp.ge.s32.totalorder %s1117_s12, 3  ;;  %s267_s26 = int_to_ptr.hbm [resolvable:$true] %s266_s26 }
  0x1b   : > { %871 = dma.hbm_to_vmem [thread:$0]  (!%p869_p0), %s267_s26, 16, %s269_s28, [#allocation6]  }
  0x1c   : > { %302 = sbr.rel (%p808_p2) target bundleno = 70 (0x46), region = 48 }
  0x1e   : > { %s281_s16 = sshll.u32 %s1688_s4, 4  ;;  %s282_s16 = int_to_ptr.hbm [resolvable:$true] %s281_s16 }
  0x1f   : > { %874 = dma.hbm_to_vmem [thread:$0]  (!%p869_p0), %s282_s16, 16, %s284_s18, [#allocation6]  }
  0x21   : > { %305 = sbr.rel (!%p1216_p5) target bundleno = 70 (0x46), region = 52  ;;  %s306_s24 = sand.u32 (%p1216_p5), 1, %s1113_s11  }
  0x22   : > { %s810_s25 = sshll.u32 (%p1216_p5), %s1117_s12, 1  ;;  %s809_s27 = sshll.u32 (%p1216_p5), %s306_s24, 5 }
  0x23   : > { %s312_s29 = ssub.s32 (%p1216_p5), 5, %s810_s25  ;;  %s1259_s18 = scalar_lea.sflag (%p1216_p5), [#allocation3], %s306_s24 }
  0x24   : > { %p313_p3 = scmp.lt.s32.totalorder (%p1216_p5), %s312_s29, 2  ;;  %s310_s16 = scalar_lea.vmem (%p1216_p5), [#allocation2], %s809_s27 }
  0x26   : > { %s1701_s29 = smov (!%p313_p3, %s312_s29), 2 }
  0x27   : > { %s836_s14 = sshll.u32 %s1701_s29, 4 }
  0x28   : > { %s317_s26 = ssub.s32 32, %s836_s14 }
  0x29   : > { %s318_s28 = sshll.u32 %s317_s26, 4 }
  0x2a   : > { %319 = vsyncadd %s1259_s18, %s318_s28  ;;  %p1262_p5 = scmp.ne.s32.totalorder %s836_s14, 0  ;;  %s838_s17 = sshll.u32 %s1117_s12, 5 }
  0x2b   : > { %s323_s4 = scalar_lea.hbm %s1662_s0, %s838_s17  ;;  %s1270_s11 = sshll.u32 %s310_s16, 4  ;;  %s328_s11 = int_to_ptr.vmem [resolvable:$true] %s1270_s11 }
  0x2c   : > { %s325_s24 = sshll.u32 %s323_s4, 4  ;;  %s1673_s27 = sshll.u32 %s1701_s29, 8  ;;  %s1273_s24 = int_to_ptr.hbm [resolvable:$true] %s325_s24 }
  0x2d   : > { %s997_s26 = sshra.s32 %s1273_s24, 4  ;;  %s999_s14 = sshrl.u32 %s1673_s27, 4  ;;  %s998_s26 = int_to_ptr.hbm [resolvable:$true] %s997_s26 }
  0x2e   : > { %s1004_s28 = scalar_lea.hbm %s998_s26, %s999_s14  ;;  %s1008_s16 = scalar_lea.hbm %s1662_s0, 80 }
  0x2f   : > { %p1005_p7 = scmp.ne.s32.totalorder %s998_s26, %s1004_s28  ;;  %p1009_p10 = scmp.lt.s32.totalorder %s998_s26, %s1662_s0 }
  0x30   : > { %p1010_p1 = scmp.lt.s32.totalorder %s1008_s16, %s1004_s28 }
  0x31   : > { %p1006_p8 = pnand %p1005_p7, %p1262_p5 }
  0x32   : > { %p1011_p0 = por %p1010_p1, %p1009_p10 }
  0x33   : > { %p1007_p9 = pneg %p1006_p8 }
  0x35   : > { %p1012_p2 = pnand %p1011_p0, %p1007_p9 }
  0x37   : > { %1015 = shalt.err (!%p1012_p2)
}
  0x38   : > { %s1016_s27 = sshra.s32 %s328_s11, 4  ;;  %s1121_s2 = smov [#allocation2]   ;;  %s1017_s27 = int_to_ptr.vmem [resolvable:$true] %s1016_s27 }
  0x39   : > { %s1023_s15 = scalar_lea.vmem %s1017_s27, %s999_s14  ;;  %s1027_s17 = scalar_lea.vmem %s1121_s2, 64 }
  0x3a   : > { %p1024_p3 = scmp.ne.s32.totalorder %s1017_s27, %s1023_s15  ;;  %p1029_p4 = scmp.lt.s32.totalorder %s1027_s17, %s1023_s15 }
  0x3c   : > { %p1025_p7 = pnand %p1024_p3, %p1262_p5 }
  0x3e   : > { %p1026_p8 = pneg %p1025_p7 }
  0x40   : > { %p1031_p12 = pnand %p1029_p4, %p1026_p8 }
  0x42   : > { %1034 = shalt.err (!%p1031_p12)
}
  0x43   : > { %s1122_s26 = smov 256   ;;  %s1123_s28 = smov 16  }
  0x44   : > { %s1690_s16 = sshll.u32 %s1701_s29, 8 }
  0x45   : > { %333 = dma.hbm_to_vmem [thread:$0]  (%p1262_p5), %s1273_s24, %s1690_s16, %s328_s11, %s1259_s18, %s1122_s26, %s1122_s26, %s1123_s28  }
  0x46 PF: > { %339 = sbr.rel (%p1237_p13) target bundleno = 722 (0x2d2), region = 56  ;;  %s1302_s15 = sand.u32 (!%p1237_p13), 1, %s1109_s10  }
  0x47   : > { %s819_s27 = sshll.u32 (!%p1237_p13), %s1302_s15, 5  ;;  %s342_s14 = scalar_lea.sflag (!%p1237_p13), [#allocation3], %s1302_s15 }
  0x48   : > { %s1308_s25 = scalar_lea.vmem (!%p1237_p13), [#allocation2], %s819_s27 }
  0x4b   : > { %1092 = dma.done.wait (%p1222_p6), %s342_s14, 512  }
  0x4c   : > { %1094 = vsyncadd (%p1222_p6), %s342_s14, 4294966784  ;;  %p1691_p4 = scmp.eq.s32.totalorder %s1198_s13, 0 }
  0x4e   : > { %1096 = dma.done.wait (%p1691_p4), [#allocation6], 32   ;;  %p1692_p12 = pmov %p1691_p4 }
  0x4f   : > { %v422_v0 = vld [vmem:[%s1663_s1 + $0x78] sm:$0xff]  ;;  %v421_v1 = vld [vmem:[%s1663_s1 + $0x70] sm:$0xff]  ;;  %v420_v2 = vld [vmem:[%s1663_s1 + $0x68] sm:$0xff]  ;;  %vm436_vm0 = vcmask 588800   ;;  %s390_s20 = scalar_lea.vmem [#allocation8], %s819_s27  ;;  %s688_s4 = scalar_lea.sflag [#allocation4], %s1302_s15 }
  0x50   : > { %1098 = vsyncadd (%p1692_p12), [#allocation6], 4294967264  ;;  %443 = vmatpush.msra.mxu0 %v422_v0  ;;  %v431_v3 = vld [vmem:[%s1663_s1 + $0xc0] sm:$0xff]  ;;  %v430_v4 = vld [vmem:[%s1663_s1 + $0xb8] sm:$0xff]  ;;  %s826_s2 = sshll.u32 (%p1229_p11), %s1198_s13, 1 }
  0x51   : > { %v419_v5 = vld [vmem:[%s1663_s1 + $0x60] sm:$0xff]  ;;  %473 = vmatpush.msra.mxu1 %v431_v3  ;;  %v429_v6 = vld [vmem:[%s1663_s1 + $0xb0] sm:$0xff]  ;;  %v418_v7 = vld [vmem:[%s1663_s1 + $0x58] sm:$0xff]  ;;  %s696_s17 = ssub.s32 (%p1229_p11), 5, %s826_s2 }
  0x52   : > { %444 = vmatpush.msra.mxu0 %v421_v1  ;;  %v428_v8 = vld [vmem:[%s1663_s1 + $0xa8] sm:$0xff]  ;;  %v417_v9 = vld [vmem:[%s1663_s1 + $0x50] sm:$0xff]  ;;  %v427_v10 = vld [vmem:[%s1663_s1 + $0xa0] sm:$0xff]  ;;  %p697_p6 = scmp.lt.s32.totalorder (%p1229_p11), %s696_s17, 2 }
  0x53   : > { %474 = vmatpush.msra.mxu1 %v430_v4  ;;  %v512_v11 = vld [vmem:[%s1665_s3 + $0x78] sm:$0xff]  ;;  %v416_v12 = vld [vmem:[%s1663_s1 + $0x48] sm:$0xff]  ;;  %v511_v13 = vld [vmem:[%s1665_s3 + $0x70] sm:$0xff] }
  0x54   : > { %445 = vmatpush.msra.mxu0 %v420_v2  ;;  %517 = vmatpush.msra.mxu2 %v512_v11  ;;  %v426_v14 = vld [vmem:[%s1663_s1 + $0x98] sm:$0xff]  ;;  %v510_v15 = vld [vmem:[%s1665_s3 + $0x68] sm:$0xff]  ;;  %v415_v16 = vld [vmem:[%s1663_s1 + $0x40] sm:$0xff] }
  0x55   : > { %475 = vmatpush.msra.mxu1 %v429_v6  ;;  %v425_v17 = vld [vmem:[%s1663_s1 + $0x90] sm:$0xff]  ;;  %v509_v18 = vld [vmem:[%s1665_s3 + $0x60] sm:$0xff]  ;;  %v414_v19 = vld [vmem:[%s1663_s1 + $0x38] sm:$0xff] }
  0x56   : > { %446 = vmatpush.msra.mxu0 %v419_v5  ;;  %518 = vmatpush.msra.mxu2 %v511_v13  ;;  %v424_v20 = vld [vmem:[%s1663_s1 + $0x88] sm:$0xff]  ;;  %v508_v21 = vld [vmem:[%s1665_s3 + $0x58] sm:$0xff]  ;;  %v413_v22 = vld [vmem:[%s1663_s1 + $0x30] sm:$0xff] }
  0x57   : > { %476 = vmatpush.msra.mxu1 %v428_v8  ;;  %v423_v23 = vld [vmem:[%s1663_s1 + $0x80] sm:$0xff]  ;;  %v507_v24 = vld [vmem:[%s1665_s3 + $0x50] sm:$0xff]  ;;  %v412_v25 = vld [vmem:[%s1663_s1 + $0x28] sm:$0xff] }
  0x58   : > { %447 = vmatpush.msra.mxu0 %v418_v7  ;;  %519 = vmatpush.msra.mxu2 %v510_v15  ;;  %v404_v26 = vld [vmem:[%s1308_s25 + $0x8] sm:$0xff]  ;;  %v411_v28 = vld [vmem:[%s1663_s1 + $0x20] sm:$0xff]  ;;  %v410_v29 = vld [vmem:[%s1663_s1 + $0x18] sm:$0xff] }
  0x59   : > { %477 = vmatpush.msra.mxu1 %v427_v10  ;;  %v506_v27 = vld [vmem:[%s1665_s3 + $0x48] sm:$0xff]  ;;  %v409_v30 = vld [vmem:[%s1663_s1 + $0x10] sm:$0xff]  ;;  %v406_v32 = vld [vmem:[%s1308_s25 + $0x18] sm:$0xff] }
  0x5a   : > { %448 = vmatpush.msra.mxu0 %v417_v9  ;;  %520 = vmatpush.msra.mxu2 %v509_v18  ;;  %v408_v31 = vld [vmem:[%s1663_s1 + $0x8] sm:$0xff]  ;;  %v407_v33 = vld [vmem:[%s1663_s1] sm:$0xff]  ;;  %v405_v35 = vld [vmem:[%s1308_s25 + $0x10] sm:$0xff] }
  0x5b   : > { %478 = vmatpush.msra.mxu1 %v426_v14  ;;  %v403_v34 = vld [vmem:[%s1308_s25] sm:$0xff]  ;;  %v504_v37 = vld [vmem:[%s1665_s3 + $0x38] sm:$0xff]  ;;  %v503_v38 = vld [vmem:[%s1665_s3 + $0x30] sm:$0xff] }
  0x5c   : > { %449 = vmatpush.msra.mxu0 %v416_v12  ;;  %521 = vmatpush.msra.mxu2 %v508_v21  ;;  %v505_v36 = vld [vmem:[%s1665_s3 + $0x40] sm:$0xff]  ;;  %v502_v39 = vld [vmem:[%s1665_s3 + $0x28] sm:$0xff]  ;;  %v500_v41 = vld [vmem:[%s1665_s3 + $0x18] sm:$0xff] }
  0x5d   : > { %479 = vmatpush.msra.mxu1 %v425_v17  ;;  %v501_v40 = vld [vmem:[%s1665_s3 + $0x20] sm:$0xff]  ;;  %v499_v42 = vld [vmem:[%s1665_s3 + $0x10] sm:$0xff]  ;;  %v498_v43 = vld [vmem:[%s1665_s3 + $0x8] sm:$0xff] }
  0x5e   : > { %450 = vmatpush.msra.mxu0 %v415_v16  ;;  %522 = vmatpush.msra.mxu2 %v507_v24  ;;  %v497_v44 = vld [vmem:[%s1665_s3] sm:$0xff]  ;;  %v563_v45 = vld [vmem:[%s1667_s5 + $0x78] sm:$0xff]  ;;  %v562_v46 = vld [vmem:[%s1667_s5 + $0x70] sm:$0xff] }
  0x5f   : > { %480 = vmatpush.msra.mxu1 %v424_v20  ;;  %568 = vmatpush.msra.mxu3 %v563_v45  ;;  %v561_v47 = vld [vmem:[%s1667_s5 + $0x68] sm:$0xff]  ;;  %v922_v48 = vld [vmem:[#allocation5] ss:$0 sm:$0xff]  ;;  %v559_v52 = vld [vmem:[%s1667_s5 + $0x58] sm:$0xff] }
  0x60   : > { %451 = vmatpush.msra.mxu0 %v414_v19  ;;  %523 = vmatpush.msra.mxu2 %v506_v27  ;;  %v560_v50 = vld [vmem:[%s1667_s5 + $0x60] sm:$0xff]  ;;  %v558_v54 = vld [vmem:[%s1667_s5 + $0x50] sm:$0xff]  ;;  %v557_v56 = vld [vmem:[%s1667_s5 + $0x48] sm:$0xff] }
  0x61   : > { %481 = vmatpush.msra.mxu1 %v423_v23  ;;  %569 = vmatpush.msra.mxu3 %v562_v46  ;;  %v556_v58 = vld [vmem:[%s1667_s5 + $0x40] sm:$0xff]  ;;  %v555_v6 = vld [vmem:[%s1667_s5 + $0x38] sm:$0xff]  ;;  %v554_v7 = vld [vmem:[%s1667_s5 + $0x30] sm:$0xff] }
  0x62   : > { %452 = vmatpush.msra.mxu0 %v413_v22  ;;  %823 = vmatmul.msk.f32.vlgmr.msra.gmra.mxu1 %vm436_vm0, %v404_v26  ;;  %v553_v8 = vld [vmem:[%s1667_s5 + $0x28] sm:$0xff]  ;;  %v552_v9 = vld [vmem:[%s1667_s5 + $0x20] sm:$0xff]  ;;  %v551_v10 = vld [vmem:[%s1667_s5 + $0x18] sm:$0xff] }
  0x63   : > { %524 = vmatpush.msra.mxu2 %v505_v36  ;;  %570 = vmatpush.msra.mxu3 %v561_v47  ;;  %v550_v11 = vld [vmem:[%s1667_s5 + $0x10] sm:$0xff]  ;;  %v549_v12 = vld [vmem:[%s1667_s5 + $0x8] sm:$0xff]  ;;  %v548_v13 = vld [vmem:[%s1667_s5] sm:$0xff] }
  0x64   : > { %453 = vmatpush.msra.mxu0 %v412_v25  ;;  %v629_v14 = vld [vmem:[%s1669_s7 + $0xf0] sm:$0xff]  ;;  %v630_v15 = vld [vmem:[%s1669_s7 + $0xf8] sm:$0xff]  ;;  %v627_v16 = vld [vmem:[%s1669_s7 + $0xe0] sm:$0xff] }
  0x65   : > { %525 = vmatpush.msra.mxu2 %v504_v37  ;;  %571 = vmatpush.msra.mxu3 %v560_v50  ;;  %v628_v17 = vld [vmem:[%s1669_s7 + $0xe8] sm:$0xff]  ;;  %v625_v18 = vld [vmem:[%s1669_s7 + $0xd0] sm:$0xff]  ;;  %v626_v19 = vld [vmem:[%s1669_s7 + $0xd8] sm:$0xff] }
  0x66   : > { %454 = vmatpush.msra.mxu0 %v411_v28  ;;  %637 = vmatpush.msrb.mxu1 %v629_v14  ;;  %v623_v20 = vld [vmem:[%s1669_s7 + $0xc0] sm:$0xff]  ;;  %v624_v21 = vld [vmem:[%s1669_s7 + $0xc8] sm:$0xff]  ;;  %v621_v23 = vld [vmem:[%s1669_s7 + $0xb0] sm:$0xff] }
  0x67   : > { %526 = vmatpush.msra.mxu2 %v503_v38  ;;  %572 = vmatpush.msra.mxu3 %v559_v52  ;;  %v923_v22 = vld [vmem:[#allocation7] ss:$0 sm:$0xff]  ;;  %v622_v24 = vld [vmem:[%s1669_s7 + $0xb8] sm:$0xff]  ;;  %v620_v27 = vld [vmem:[%s1669_s7 + $0xa8] sm:$0xff] }
  0x68   : > { %455 = vmatpush.msra.mxu0 %v410_v29  ;;  %638 = vmatpush.msrb.mxu1 %v627_v16  ;;  %v619_v26 = vld [vmem:[%s1669_s7 + $0xa0] sm:$0xff]  ;;  %v617_v29 = vld [vmem:[%s1669_s7 + $0x90] sm:$0xff]  ;;  %v612_v46 = vld [vmem:[%s1669_s7 + $0x68] sm:$0xff] }
  0x69   : > { %527 = vmatpush.msra.mxu2 %v502_v39  ;;  %573 = vmatpush.msra.mxu3 %v558_v54  ;;  %v611_v45 = vld [vmem:[%s1669_s7 + $0x60] sm:$0xff]  ;;  %v609_v47 = vld [vmem:[%s1669_s7 + $0x50] sm:$0xff]  ;;  %v608_v50 = vld [vmem:[%s1669_s7 + $0x48] sm:$0xff] }
  0x6a   : > { %456 = vmatpush.msra.mxu0 %v409_v30  ;;  %824 = vmatmul.msk.f32.gmra.mxu1 %vm436_vm0, %v406_v32  ;;  %v618_v30 = vld [vmem:[%s1669_s7 + $0x98] sm:$0xff]  ;;  %v615_v32 = vld [vmem:[%s1669_s7 + $0x80] sm:$0xff]  ;;  %v604_v54 = vld [vmem:[%s1669_s7 + $0x28] sm:$0xff] }
  0x6b   : > { %528 = vmatpush.msra.mxu2 %v501_v40  ;;  %574 = vmatpush.msra.mxu3 %v557_v56  ;;  %v606_v52 = vld [vmem:[%s1669_s7 + $0x38] sm:$0xff] }
  0x6c   : > { %457 = vmatpush.msra.mxu0 %v408_v31  ;;  %639 = vmatpush.msrb.mxu1 %v625_v18  ;;  %v602_v56 = vld [vmem:[%s1669_s7 + $0x18] sm:$0xff] }
  0x6d   : > { %529 = vmatpush.msra.mxu2 %v500_v41  ;;  %575 = vmatpush.msra.mxu3 %v556_v58  ;;  %v600_v58 = vld [vmem:[%s1669_s7 + $0x8] sm:$0xff] }
  0x6e   : > { %458 = vmatpush.msra.mxu0 %v407_v33  ;;  %640 = vmatpush.msrb.mxu1 %v623_v20  ;;  %v616_v33 = vld [vmem:[%s1669_s7 + $0x88] sm:$0xff] }
  0x6f   : > { %459 = vmatmul.f32.vlgmr.msra.gmra.mxu0 %v403_v34  ;;  %530 = vmatpush.msra.mxu2 %v499_v42 }
  0x70   : > { %576 = vmatpush.msra.mxu3 %v555_v6  ;;  %660 = vmatpush.msrb.mxu0 %v630_v15 }
  0x71   : > { %531 = vmatpush.msra.mxu2 %v498_v43  ;;  %641 = vmatpush.msrb.mxu1 %v621_v23  ;;  %v613_v43 = vld [vmem:[%s1669_s7 + $0x70] sm:$0xff] }
  0x72   : > { %577 = vmatpush.msra.mxu3 %v554_v7  ;;  %661 = vmatpush.msrb.mxu0 %v628_v17 }
  0x73   : > { %532 = vmatpush.msra.mxu2 %v497_v44  ;;  %642 = vmatpush.msrb.mxu1 %v619_v26  ;;  %v614_v44 = vld [vmem:[%s1669_s7 + $0x78] sm:$0xff] }
  0x74   : > { %578 = vmatpush.msra.mxu3 %v553_v8  ;;  %662 = vmatpush.msrb.mxu0 %v626_v19  ;;  %v631_v8 = vld [vmem:[%s1670_s8] sm:$0x3] }
  0x75   : > { %842 = vmatpush.msrb.mxu2 %v630_v15  ;;  %643 = vmatpush.msrb.mxu1 %v617_v29 }
  0x76   : > { %579 = vmatpush.msra.mxu3 %v552_v9  ;;  %663 = vmatpush.msrb.mxu0 %v624_v21  ;;  %v633_v9 = vperm.slane %v631_v8, 0 }
  0x77   : > { %462 = vmatmul.f32.gmra.mxu0 %v405_v35  ;;  %843 = vmatpush.msrb.mxu2 %v628_v17 }
  0x78   : > { %580 = vmatpush.msra.mxu3 %v551_v10  ;;  %664 = vmatpush.msrb.mxu0 %v622_v24  ;;  %v634_v10 = vperm.slane %v631_v8, 1 }
  0x79   : > { %844 = vmatpush.msrb.mxu2 %v626_v19  ;;  %644 = vmatpush.msrb.mxu1 %v615_v32 }
  0x7a   : > { %581 = vmatpush.msra.mxu3 %v550_v11  ;;  %665 = vmatpush.msrb.mxu0 %v620_v27 }
  0x7b   : > { %845 = vmatpush.msrb.mxu2 %v624_v21  ;;  %645 = vmatpush.msrb.mxu1 %v613_v43 }
  0x7c   : > { %582 = vmatpush.msra.mxu3 %v549_v12  ;;  %666 = vmatpush.msrb.mxu0 %v618_v30 }
  0x7d   : > { %846 = vmatpush.msrb.mxu2 %v622_v24  ;;  %646 = vmatpush.msrb.mxu1 %v611_v45 }
  0x7e   : > { %583 = vmatpush.msra.mxu3 %v548_v13  ;;  %667 = vmatpush.msrb.mxu0 %v616_v33 }
  0x7f   : > { %847 = vmatpush.msrb.mxu2 %v620_v27  ;;  %647 = vmatpush.msrb.mxu1 %v609_v47 }
  0x80   : > { %668 = vmatpush.msrb.mxu0 %v614_v44 }
  0x81   : > { %848 = vmatpush.msrb.mxu2 %v618_v30 }
  0x82   : > { %669 = vmatpush.msrb.mxu0 %v612_v46 }
  0x83   : > { %849 = vmatpush.msrb.mxu2 %v616_v33 }
  0x85   : > { %850 = vmatpush.msrb.mxu2 %v614_v44 }
  0x87   : > { %851 = vmatpush.msrb.mxu2 %v612_v46 }
  0xdf   : > { %v483_v49 = vpop.f32.mrf.mxu1 }
  0xe7   : > { %v486_v60 = vpop.f32.mrf.mxu1 }
  0xec   : > { %v460_v51 = vpop.f32.mrf.mxu0 }
  0xed   : > { %v461_v53 = vadd.f32 %v922_v48, %v460_v51  ;;  %v605_v51 = vld [vmem:[%s1669_s7 + $0x30] sm:$0xff] }
  0xef   : > { %v484_v55 = vadd.f32 %v483_v49, %v461_v53  ;;  %v607_v49 = vld [vmem:[%s1669_s7 + $0x40] sm:$0xff] }
  0xf0   : > { %648 = vmatpush.msrb.mxu1 %v607_v49  ;;  %v603_v53 = vld [vmem:[%s1669_s7 + $0x20] sm:$0xff] }
  0xf1   : > { %v489_v57 = vmul.f32 0.5, %v484_v55  ;;  %v601_v55 = vld [vmem:[%s1669_s7 + $0x10] sm:$0xff] }
  0xf2   : > { %649 = vmatpush.msrb.mxu1 %v605_v51 }
  0xf3   : > { %925 = vtanh.f32 %v489_v57  ;;  %v599_v57 = vld [vmem:[%s1669_s7] sm:$0xff] }
  0xf4   : > { %v463_v59 = vpop.f32.mrf.mxu0  ;;  %650 = vmatpush.msrb.mxu1 %v603_v53 }
  0xf5   : > { %v464_v61 = vadd.f32 %v922_v48, %v463_v59  ;;  %v610_v48 = vld [vmem:[%s1669_s7 + $0x58] sm:$0xff]  ;;  %v924_v59 = vld [vmem:[%s1668_s6] ss:$0 sm:$0xff] }
  0xf6   : > { %670 = vmatpush.msrb.mxu0 %v610_v48  ;;  %852 = vmatpush.msrb.mxu2 %v610_v48 }
  0xf7   : > { %v487_v62 = vadd.f32 %v486_v60, %v464_v61  ;;  %651 = vmatpush.msrb.mxu1 %v601_v55 }
  0xf8   : > { %671 = vmatpush.msrb.mxu0 %v608_v50  ;;  %853 = vmatpush.msrb.mxu2 %v608_v50 }
  0xf9   : > { %v926_v63 = vpop.eup %925  ;;  %v490_v0 = vmul.f32 0.5, %v487_v62  ;;  %652 = vmatpush.msrb.mxu1 %v599_v57 }
  0xfa   : > { %v493_v1 = vmul.f32 0.5, %v926_v63  ;;  %672 = vmatpush.msrb.mxu0 %v606_v52  ;;  %854 = vmatpush.msrb.mxu2 %v606_v52 }
  0xfb   : > { %927 = vtanh.f32 %v490_v0 }
  0xfc   : > { %v495_v2 = vadd.f32 0.5, %v493_v1  ;;  %673 = vmatpush.msrb.mxu0 %v604_v54  ;;  %855 = vmatpush.msrb.mxu2 %v604_v54 }
  0xfe   : > { %533 = vmatmul.f32.vlgmr.msra.gmra.mxu2 %v495_v2  ;;  %674 = vmatpush.msrb.mxu0 %v602_v56 }
  0xff   : > { %856 = vmatpush.msrb.mxu2 %v602_v56 }
 0x100   : > { %675 = vmatpush.msrb.mxu0 %v600_v58 }
 0x101   : > { %v928_v3 = vpop.eup %927  ;;  %857 = vmatpush.msrb.mxu2 %v600_v58 }
 0x102   : > { %v494_v4 = vmul.f32 0.5, %v928_v3 }
 0x104   : > { %v496_v5 = vadd.f32 0.5, %v494_v4 }
 0x106   : > { %536 = vmatmul.f32.gmra.mxu2 %v496_v5 }
 0x181   : > { %v534_v25 = vpop.f32.mrf.mxu2 }
 0x182   : > { %v535_v28 = vadd.f32 %v923_v22, %v534_v25 }
 0x184   : > { %v540_v31 = vmul.f32 0.5, %v535_v28 }
 0x186   : > { %929 = vtanh.f32 %v540_v31 }
 0x189   : > { %v537_v34 = vpop.f32.mrf.mxu2 }
 0x18a   : > { %v538_v35 = vadd.f32 %v923_v22, %v537_v34 }
 0x18c   : > { %v930_v36 = vpop.eup %929  ;;  %v541_v37 = vmul.f32 0.5, %v538_v35 }
 0x18d   : > { %v544_v38 = vmul.f32 0.5, %v930_v36 }
 0x18e   : > { %931 = vtanh.f32 %v541_v37 }
 0x18f   : > { %v546_v39 = vadd.f32 0.5, %v544_v38 }
 0x191   : > { %584 = vmatmul.f32.vlgmr.msra.gmra.mxu3 %v546_v39 }
 0x194   : > { %v932_v40 = vpop.eup %931 }
 0x195   : > { %v545_v41 = vmul.f32 0.5, %v932_v40 }
 0x197   : > { %v547_v42 = vadd.f32 0.5, %v545_v41 }
 0x199   : > { %587 = vmatmul.f32.gmra.mxu3 %v547_v42 }
 0x214   : > { %v585_v60 = vpop.f32.mrf.mxu3 }
 0x215   : > { %v586_v61 = vadd.f32 %v924_v59, %v585_v60 }
 0x217   : > { %v591_v62 = vmul.f32 0.5, %v586_v61 }
 0x219   : > { %933 = vtanh.f32 %v591_v62 }
 0x21c   : > { %v588_v63 = vpop.f32.mrf.mxu3 }
 0x21d   : > { %v589_v0 = vadd.f32 %v924_v59, %v588_v63 }
 0x21f   : > { %v934_v1 = vpop.eup %933  ;;  %v592_v2 = vmul.f32 0.5, %v589_v0 }
 0x220   : > { %v595_v3 = vmul.f32 0.5, %v934_v1 }
 0x221   : > { %935 = vtanh.f32 %v592_v2 }
 0x222   : > { %v597_v4 = vadd.f32 0.5, %v595_v3 }
 0x224   : > { %653 = vmatmul.f32.vlgmr.msrb.gmra.mxu1 %v597_v4  ;;  %676 = vmatmul.f32.vlgmr.msrb.gmra.mxu0 %v597_v4 }
 0x227   : > { %v936_v5 = vpop.eup %935 }
 0x228   : > { %v596_v6 = vmul.f32 0.5, %v936_v5 }
 0x22a   : > { %v598_v7 = vadd.f32 0.5, %v596_v6 }
 0x22c   : > { %656 = vmatmul.f32.gmra.mxu1 %v598_v7  ;;  %679 = vmatmul.f32.vlgmr.msrb.gmra.mxu2 %v598_v7 }
 0x2a1   : > { %v654_v11 = vpop.f32.mrf.mxu1  ;;  %v677_v12 = vpop.f32.mrf.mxu0 }
 0x2a2   : > { %v655_v13 = vadd.f32 %v654_v11, %v633_v9  ;;  %v678_v14 = vadd.f32 %v677_v12, %v634_v10 }
 0x2a4   : > { %683 = vst [vmem:[%s390_s20] sm:$0xff] %v655_v13 }
 0x2a5   : > { %684 = vst.msk [vmem:[%s390_s20 + $0x8] sm:$0xff] %vm436_vm0, %v678_v14 }
 0x2a9   : > { %v657_v15 = vpop.f32.mrf.mxu1 }
 0x2aa   : > { %v658_v16 = vadd.f32 %v657_v15, %v633_v9 }
 0x2ac   : > { %685 = vst [vmem:[%s390_s20 + $0x10] sm:$0xff] %v658_v16 }
 0x2ae   : > { %694 = sbr.rel (!%p1229_p11) target bundleno = 722 (0x2d2), region = 72 }
 0x2af   : > { %v680_v17 = vpop.f32.mrf.mxu2 }
 0x2b0   : > { %v681_v18 = vadd.f32 %v680_v17, %v634_v10 }
 0x2b2   : > { %686 = vst.msk [vmem:[%s390_s20 + $0x18] sm:$0xff] %vm436_vm0, %v681_v18 }
 0x2b3   : > { %s1703_s17 = smov (!%p697_p6, %s696_s17), 2 }
 0x2b4   : > { %s839_s27 = sshll.u32 %s1703_s17, 4 }
 0x2b5   : > { %s701_s26 = ssub.s32 32, %s839_s27 }
 0x2b6   : > { %s702_s28 = sshll.u32 %s701_s26, 4 }
 0x2b7   : > { %703 = vsyncadd %s688_s4, %s702_s28  ;;  %p1610_p13 = scmp.ne.s32.totalorder %s839_s27, 0  ;;  %s841_s21 = sshll.u32 %s1198_s13, 5 }
 0x2b8   : > { %s707_s23 = scalar_lea.hbm %s1671_s9, %s841_s21  ;;  %s709_s25 = sshll.u32 %s390_s20, 4  ;;  %s1618_s25 = int_to_ptr.vmem [resolvable:$true] %s709_s25 }
 0x2b9   : > { %s711_s29 = sshll.u32 %s707_s23, 4  ;;  %s833_s18 = sshll.u32 %s1703_s17, 8  ;;  %s1620_s29 = int_to_ptr.hbm [resolvable:$true] %s711_s29 }
 0x2ba   : > { %s1036_s19 = sshra.s32 %s1618_s25, 4  ;;  %s1038_s24 = sshrl.u32 %s833_s18, 4  ;;  %s1037_s19 = int_to_ptr.vmem [resolvable:$true] %s1036_s19 }
 0x2bb   : > { %s1043_s2 = scalar_lea.vmem %s1037_s19, %s1038_s24  ;;  %s1124_s13 = smov [#allocation8]  }
 0x2bc   : > { %p1044_p11 = scmp.ne.s32.totalorder %s1037_s19, %s1043_s2  ;;  %s1047_s27 = scalar_lea.vmem %s1124_s13, 64 }
 0x2bd   : > { %p1049_p10 = scmp.lt.s32.totalorder %s1047_s27, %s1043_s2 }
 0x2be   : > { %p1045_p5 = pnand %p1044_p11, %p1610_p13 }
 0x2c0   : > { %p1046_p9 = pneg %p1045_p5 }
 0x2c2   : > { %p1051_p1 = pnand %p1049_p10, %p1046_p9 }
 0x2c4   : > { %1054 = shalt.err (!%p1051_p1)
}
 0x2c5   : > { %s1055_s20 = sshra.s32 %s1620_s29, 4  ;;  %s1066_s14 = scalar_lea.hbm %s1671_s9, 80  ;;  %s1056_s20 = int_to_ptr.hbm [resolvable:$true] %s1055_s20 }
 0x2c6   : > { %s1062_s26 = scalar_lea.hbm %s1056_s20, %s1038_s24  ;;  %p1067_p7 = scmp.lt.s32.totalorder %s1056_s20, %s1671_s9 }
 0x2c7   : > { %p1063_p0 = scmp.ne.s32.totalorder %s1056_s20, %s1062_s26  ;;  %p1068_p8 = scmp.lt.s32.totalorder %s1066_s14, %s1062_s26 }
 0x2c9   : > { %p1064_p2 = pnand %p1063_p0, %p1610_p13  ;;  %p1069_p4 = por %p1068_p8, %p1067_p7 }
 0x2cb   : > { %p1065_p3 = pneg %p1064_p2 }
 0x2cd   : > { %p1070_p12 = pnand %p1069_p4, %p1065_p3 }
 0x2cf   : > { %1073 = shalt.err (!%p1070_p12)
}
 0x2d0   : > { %s1125_s19 = smov 256   ;;  %s1126_s24 = smov 16  }
 0x2d1   : > { %717 = dma.vmem_to_hbm [thread:$0]  (%p1610_p13), %s1618_s25, %s833_s18, %s1620_s29, %s688_s4, %s1125_s19, %s1125_s19, %s1126_s24  }
 0x2d2 PF: > { %p883_p6 = scmp.ge.s32.totalorder %s1117_s12, 2  ;;  %s726_s2 = sand.u32 1, %s1105_s30  }
 0x2d3   : > { %p1694_p11 = scmp.ne.s32.totalorder %s1685_s22, 0  ;;  %s727_s13 = scalar_lea.sflag [#allocation4], %s726_s2 }
 0x2d5   : > { %p876_p5 = pnand %p883_p6, %p1694_p11 }
 0x2d7   : > { %p877_p9 = pneg %p876_p5 }
 0x2d9   : > { %1100 = dma.done.wait (%p877_p9), %s727_s13, 512  }
 0x2da   : > { %1102 = vsyncadd (%p877_p9), %s727_s13, 4294966784  ;;  %s1695_s12 = sld [smem:[#allocation13_spill]]  ;;  %s1698_s30 = smov %s1109_s10 }
 0x2db   : > { %s1696_s27 = sld [smem:[#allocation12_spill]] }
 0x2dc   : > { %s1697_s11 = sld [smem:[#allocation14_spill]] }
 0x2e0   : > { %p23_p10 = scmp.ge.s32.totalorder %s1695_s12, 5  }
 0x2e1   : > { %s1699_s10 = smov %s1696_s27 }
 0x2e2   :  { %25 = sbr.rel (!%p23_p10) target bundleno = 9 (0x9), region = 109 }
 0x2e7   :  { %733 = vsyncpa [#allocation3], 1 }
 0x2e8   :  { %735 = vsyncpa [#allocation3 + $0x1], 1 }
 0x2e9   :  { %736 = vsyncpa [#allocation6], 1 }
 0x2ea   :  { %737 = vsyncpa [#allocation4], 1 }
 0x2eb   :  { %739 = vsyncpa [#allocation4 + $0x1], 1 }

// kernel: tpu_custom_call.1
= control target key start
LH: loop header
LB: loop body
LE: loop exit
PB: predicated region body
PF: predicated region fallthrough
CT: control target
= control target key end

     0   :  { %s1662_s0 = inlined_call_operand.hbm [shape: f32[40,200], index: 0, kind: input, shape index: {}]   ;;  %s1663_s1 = inlined_call_operand.vmem [shape: f32[200,128], index: 1, kind: input, shape index: {}]   ;;  %s1664_s2 = inlined_call_operand.hbm [shape: f32[1,128], index: 2, kind: input, shape index: {}]   ;;  %s1665_s3 = inlined_call_operand.vmem [shape: f32[128,128], index: 3, kind: input, shape index: {}]   ;;  %s1666_s4 = inlined_call_operand.hbm [shape: f32[1,128], index: 4, kind: input, shape index: {}]   ;;  %s1667_s5 = inlined_call_operand.vmem [shape: f32[128,128], index: 5, kind: input, shape index: {}]   ;;  %s1668_s6 = inlined_call_operand.vmem [shape: f32[1,128], index: 6, kind: input, shape index: {}]   ;;  %s1669_s7 = inlined_call_operand.vmem [shape: f32[128,200], index: 7, kind: input, shape index: {}]   ;;  %s1670_s8 = inlined_call_operand.vmem [shape: f32[1,200], index: 8, kind: input, shape index: {}]   ;;  %s1671_s9 = inlined_call_operand.hbm [shape: f32[40,200], index: 9, kind: output, shape index: {}]  }
   0x1   :  { %1677 = sst [smem:[#allocation15_spill]] %s1664_s2 }
   0x2   :  { %1678 = sst [smem:[#allocation16_spill]] %s1666_s4 }
   0x3   :  { %14 = vsyncpa [#allocation3], 0 }
   0x4   :  { %16 = vsyncpa [#allocation3 + $0x1], 0 }
   0x5   :  { %17 = vsyncpa [#allocation6], 0 }
   0x6   :  { %18 = vsyncpa [#allocation4], 0 }
   0x7   :  { %20 = vsyncpa [#allocation4 + $0x1], 0  ;;  %s1177_s30 = smov 0   ;;  %s1179_s10 = smov 0  }
   0x8   :  { %s1181_s11 = smov 0   ;;  %s1183_s12 = smov 0  }
   0x9 LB: > { %1679 = sst [smem:[#allocation12_spill]] %s1113_s11  ;;  %s1198_s13 = sadd.s32 4294967295, %s1117_s12   ;;  %s1117_s12 = sphi %s1183_s12, %s1695_s12   ;;  %s1113_s11 = sphi %s1181_s11, %s1697_s11   ;;  %s1109_s10 = sphi %s1179_s10, %s1699_s10   ;;  %s1105_s30 = sphi %s1177_s30, %s1698_s30  }
   0xa   : > { %s804_s14 = sadd.s32 4294967294, %s1117_s12   ;;  %s1202_s15 = sadd.s32 1, %s1117_s12  }
   0xb   : > { %1680 = sst [smem:[#allocation13_spill]] %s1202_s15  ;;  %s33_s16 = sadd.s32 1, %s1113_s11 }
   0xc   : > { %s30_s17 = ssub.s32 %s1117_s12, %s1202_s15  ;;  %p40_p0 = scmp.ne.s32.totalorder %s1113_s11, %s1109_s10 }
   0xd   : > { %p31_p1 = scmp.eq.s32.totalorder %s30_s17, 0  ;;  %p41_p2 = scmp.eq.s32.totalorder %s1117_s12, 0 }
   0xe   : > { %p46_p3 = scmp.ne.s32.totalorder %s1109_s10, %s1105_s30  ;;  %p1676_p4 = scmp.eq.s32.totalorder %s1198_s13, 0 }
   0xf   : > { %s1214_s18 = scalar_select %p31_p1, %s1113_s11, %s33_s16  }
  0x10   : > { %p1216_p5 = por %p41_p2, %p40_p0  ;;  %p1222_p6 = por %p1676_p4, %p46_p3 }
  0x11   : > { %1681 = sst [smem:[#allocation14_spill]] %s1214_s18  ;;  %p238_p7 = scmp.eq.s32.totalorder %s1198_s13, 2 }
  0x12   : > { %p244_p8 = scmp.eq.s32.totalorder %s804_s14, 2  ;;  %p805_p9 = scmp.ge.s32.totalorder %s1117_s12, 1 }
  0x13   : > { %p251_p10 = scmp.lt.s32.totalorder %s1117_s12, 4  ;;  %p1229_p11 = por %p238_p7, %p40_p0 }
  0x14   : > { %p1233_p12 = por %p244_p8, %p46_p3  ;;  %s1687_s2 = sld [smem:[#allocation15_spill]] }
  0x15   : > { %p1237_p13 = pnand %p805_p9, %p251_p10  ;;  %s1119_s27 = smov [#allocation5]  }
  0x16   : > { %s1685_s22 = scalar_select %p1233_p12, 1, 0 }
  0x17   : > { %p868_p1 = pneg %p1237_p13  ;;  %s268_s28 = sshll.u32 %s1119_s27, 4  ;;  %s269_s28 = int_to_ptr.vmem [resolvable:$true] %s268_s28 }
  0x18   : > { %s1688_s4 = sld [smem:[#allocation16_spill]]  ;;  %s1120_s17 = smov [#allocation7]  }
  0x19   : > { %p869_p0 = pnand %p868_p1, %p1676_p4  ;;  %s283_s18 = sshll.u32 %s1120_s17, 4  ;;  %s284_s18 = int_to_ptr.vmem [resolvable:$true] %s283_s18 }
  0x1a   : > { %s266_s26 = sshll.u32 %s1687_s2, 4  ;;  %p808_p2 = scmp.ge.s32.totalorder %s1117_s12, 3  ;;  %s267_s26 = int_to_ptr.hbm [resolvable:$true] %s266_s26 }
  0x1b   : > { %871 = dma.hbm_to_vmem [thread:$0]  (!%p869_p0), %s267_s26, 16, %s269_s28, [#allocation6]  }
  0x1c   : > { %302 = sbr.rel (%p808_p2) target bundleno = 70 (0x46), region = 48 }
  0x1e   : > { %s281_s16 = sshll.u32 %s1688_s4, 4  ;;  %s282_s16 = int_to_ptr.hbm [resolvable:$true] %s281_s16 }
  0x1f   : > { %874 = dma.hbm_to_vmem [thread:$0]  (!%p869_p0), %s282_s16, 16, %s284_s18, [#allocation6]  }
  0x21   : > { %305 = sbr.rel (!%p1216_p5) target bundleno = 70 (0x46), region = 52  ;;  %s306_s24 = sand.u32 (%p1216_p5), 1, %s1113_s11  }
  0x22   : > { %s810_s25 = sshll.u32 (%p1216_p5), %s1117_s12, 1  ;;  %s809_s27 = sshll.u32 (%p1216_p5), %s306_s24, 5 }
  0x23   : > { %s312_s29 = ssub.s32 (%p1216_p5), 5, %s810_s25  ;;  %s1259_s18 = scalar_lea.sflag (%p1216_p5), [#allocation3], %s306_s24 }
  0x24   : > { %p313_p3 = scmp.lt.s32.totalorder (%p1216_p5), %s312_s29, 2  ;;  %s310_s16 = scalar_lea.vmem (%p1216_p5), [#allocation2], %s809_s27 }
  0x26   : > { %s1701_s29 = smov (!%p313_p3, %s312_s29), 2 }
  0x27   : > { %s836_s14 = sshll.u32 %s1701_s29, 4 }
  0x28   : > { %s317_s26 = ssub.s32 32, %s836_s14 }
  0x29   : > { %s318_s28 = sshll.u32 %s317_s26, 4 }
  0x2a   : > { %319 = vsyncadd %s1259_s18, %s318_s28  ;;  %p1262_p5 = scmp.ne.s32.totalorder %s836_s14, 0  ;;  %s838_s17 = sshll.u32 %s1117_s12, 5 }
  0x2b   : > { %s323_s4 = scalar_lea.hbm %s1662_s0, %s838_s17  ;;  %s1270_s11 = sshll.u32 %s310_s16, 4  ;;  %s328_s11 = int_to_ptr.vmem [resolvable:$true] %s1270_s11 }
  0x2c   : > { %s325_s24 = sshll.u32 %s323_s4, 4  ;;  %s1673_s27 = sshll.u32 %s1701_s29, 8  ;;  %s1273_s24 = int_to_ptr.hbm [resolvable:$true] %s325_s24 }
  0x2d   : > { %s997_s26 = sshra.s32 %s1273_s24, 4  ;;  %s999_s14 = sshrl.u32 %s1673_s27, 4  ;;  %s998_s26 = int_to_ptr.hbm [resolvable:$true] %s997_s26 }
  0x2e   : > { %s1004_s28 = scalar_lea.hbm %s998_s26, %s999_s14  ;;  %s1008_s16 = scalar_lea.hbm %s1662_s0, 80 }
  0x2f   : > { %p1005_p7 = scmp.ne.s32.totalorder %s998_s26, %s1004_s28  ;;  %p1009_p10 = scmp.lt.s32.totalorder %s998_s26, %s1662_s0 }
  0x30   : > { %p1010_p1 = scmp.lt.s32.totalorder %s1008_s16, %s1004_s28 }
  0x31   : > { %p1006_p8 = pnand %p1005_p7, %p1262_p5 }
  0x32   : > { %p1011_p0 = por %p1010_p1, %p1009_p10 }
  0x33   : > { %p1007_p9 = pneg %p1006_p8 }
  0x35   : > { %p1012_p2 = pnand %p1011_p0, %p1007_p9 }
  0x37   : > { %1015 = shalt.err (!%p1012_p2)
}
  0x38   : > { %s1016_s27 = sshra.s32 %s328_s11, 4  ;;  %s1121_s2 = smov [#allocation2]   ;;  %s1017_s27 = int_to_ptr.vmem [resolvable:$true] %s1016_s27 }
  0x39   : > { %s1023_s15 = scalar_lea.vmem %s1017_s27, %s999_s14  ;;  %s1027_s17 = scalar_lea.vmem %s1121_s2, 64 }
  0x3a   : > { %p1024_p3 = scmp.ne.s32.totalorder %s1017_s27, %s1023_s15  ;;  %p1029_p4 = scmp.lt.s32.totalorder %s1027_s17, %s1023_s15 }
  0x3c   : > { %p1025_p7 = pnand %p1024_p3, %p1262_p5 }
  0x3e   : > { %p1026_p8 = pneg %p1025_p7 }
  0x40   : > { %p1031_p12 = pnand %p1029_p4, %p1026_p8 }
  0x42   : > { %1034 = shalt.err (!%p1031_p12)
}
  0x43   : > { %s1122_s26 = smov 256   ;;  %s1123_s28 = smov 16  }
  0x44   : > { %s1690_s16 = sshll.u32 %s1701_s29, 8 }
  0x45   : > { %333 = dma.hbm_to_vmem [thread:$0]  (%p1262_p5), %s1273_s24, %s1690_s16, %s328_s11, %s1259_s18, %s1122_s26, %s1122_s26, %s1123_s28  }
  0x46 PF: > { %339 = sbr.rel (%p1237_p13) target bundleno = 722 (0x2d2), region = 56  ;;  %s1302_s15 = sand.u32 (!%p1237_p13), 1, %s1109_s10  }
  0x47   : > { %s819_s27 = sshll.u32 (!%p1237_p13), %s1302_s15, 5  ;;  %s342_s14 = scalar_lea.sflag (!%p1237_p13), [#allocation3], %s1302_s15 }
  0x48   : > { %s1308_s25 = scalar_lea.vmem (!%p1237_p13), [#allocation2], %s819_s27 }
  0x4b   : > { %1092 = dma.done.wait (%p1222_p6), %s342_s14, 512  }
  0x4c   : > { %1094 = vsyncadd (%p1222_p6), %s342_s14, 4294966784  ;;  %p1691_p4 = scmp.eq.s32.totalorder %s1198_s13, 0 }
  0x4e   : > { %1096 = dma.done.wait (%p1691_p4), [#allocation6], 32   ;;  %p1692_p12 = pmov %p1691_p4 }
  0x4f   : > { %v422_v0 = vld [vmem:[%s1663_s1 + $0x78] sm:$0xff]  ;;  %v421_v1 = vld [vmem:[%s1663_s1 + $0x70] sm:$0xff]  ;;  %v420_v2 = vld [vmem:[%s1663_s1 + $0x68] sm:$0xff]  ;;  %vm436_vm0 = vcmask 588800   ;;  %s390_s20 = scalar_lea.vmem [#allocation8], %s819_s27  ;;  %s688_s4 = scalar_lea.sflag [#allocation4], %s1302_s15 }
  0x50   : > { %1098 = vsyncadd (%p1692_p12), [#allocation6], 4294967264  ;;  %443 = vmatpush.msra.mxu0 %v422_v0  ;;  %v431_v3 = vld [vmem:[%s1663_s1 + $0xc0] sm:$0xff]  ;;  %v430_v4 = vld [vmem:[%s1663_s1 + $0xb8] sm:$0xff]  ;;  %s826_s2 = sshll.u32 (%p1229_p11), %s1198_s13, 1 }
  0x51   : > { %v419_v5 = vld [vmem:[%s1663_s1 + $0x60] sm:$0xff]  ;;  %473 = vmatpush.msra.mxu1 %v431_v3  ;;  %v429_v6 = vld [vmem:[%s1663_s1 + $0xb0] sm:$0xff]  ;;  %v418_v7 = vld [vmem:[%s1663_s1 + $0x58] sm:$0xff]  ;;  %s696_s17 = ssub.s32 (%p1229_p11), 5, %s826_s2 }
  0x52   : > { %444 = vmatpush.msra.mxu0 %v421_v1  ;;  %v428_v8 = vld [vmem:[%s1663_s1 + $0xa8] sm:$0xff]  ;;  %v417_v9 = vld [vmem:[%s1663_s1 + $0x50] sm:$0xff]  ;;  %v427_v10 = vld [vmem:[%s1663_s1 + $0xa0] sm:$0xff]  ;;  %p697_p6 = scmp.lt.s32.totalorder (%p1229_p11), %s696_s17, 2 }
  0x53   : > { %474 = vmatpush.msra.mxu1 %v430_v4  ;;  %v512_v11 = vld [vmem:[%s1665_s3 + $0x78] sm:$0xff]  ;;  %v416_v12 = vld [vmem:[%s1663_s1 + $0x48] sm:$0xff]  ;;  %v511_v13 = vld [vmem:[%s1665_s3 + $0x70] sm:$0xff] }
  0x54   : > { %445 = vmatpush.msra.mxu0 %v420_v2  ;;  %517 = vmatpush.msra.mxu2 %v512_v11  ;;  %v426_v14 = vld [vmem:[%s1663_s1 + $0x98] sm:$0xff]  ;;  %v510_v15 = vld [vmem:[%s1665_s3 + $0x68] sm:$0xff]  ;;  %v415_v16 = vld [vmem:[%s1663_s1 + $0x40] sm:$0xff] }
  0x55   : > { %475 = vmatpush.msra.mxu1 %v429_v6  ;;  %v425_v17 = vld [vmem:[%s1663_s1 + $0x90] sm:$0xff]  ;;  %v509_v18 = vld [vmem:[%s1665_s3 + $0x60] sm:$0xff]  ;;  %v414_v19 = vld [vmem:[%s1663_s1 + $0x38] sm:$0xff] }
  0x56   : > { %446 = vmatpush.msra.mxu0 %v419_v5  ;;  %518 = vmatpush.msra.mxu2 %v511_v13  ;;  %v424_v20 = vld [vmem:[%s1663_s1 + $0x88] sm:$0xff]  ;;  %v508_v21 = vld [vmem:[%s1665_s3 + $0x58] sm:$0xff]  ;;  %v413_v22 = vld [vmem:[%s1663_s1 + $0x30] sm:$0xff] }
  0x57   : > { %476 = vmatpush.msra.mxu1 %v428_v8  ;;  %v423_v23 = vld [vmem:[%s1663_s1 + $0x80] sm:$0xff]  ;;  %v507_v24 = vld [vmem:[%s1665_s3 + $0x50] sm:$0xff]  ;;  %v412_v25 = vld [vmem:[%s1663_s1 + $0x28] sm:$0xff] }
  0x58   : > { %447 = vmatpush.msra.mxu0 %v418_v7  ;;  %519 = vmatpush.msra.mxu2 %v510_v15  ;;  %v404_v26 = vld [vmem:[%s1308_s25 + $0x8] sm:$0xff]  ;;  %v411_v28 = vld [vmem:[%s1663_s1 + $0x20] sm:$0xff]  ;;  %v410_v29 = vld [vmem:[%s1663_s1 + $0x18] sm:$0xff] }
  0x59   : > { %477 = vmatpush.msra.mxu1 %v427_v10  ;;  %v506_v27 = vld [vmem:[%s1665_s3 + $0x48] sm:$0xff]  ;;  %v409_v30 = vld [vmem:[%s1663_s1 + $0x10] sm:$0xff]  ;;  %v406_v32 = vld [vmem:[%s1308_s25 + $0x18] sm:$0xff] }
  0x5a   : > { %448 = vmatpush.msra.mxu0 %v417_v9  ;;  %520 = vmatpush.msra.mxu2 %v509_v18  ;;  %v408_v31 = vld [vmem:[%s1663_s1 + $0x8] sm:$0xff]  ;;  %v407_v33 = vld [vmem:[%s1663_s1] sm:$0xff]  ;;  %v405_v35 = vld [vmem:[%s1308_s25 + $0x10] sm:$0xff] }
  0x5b   : > { %478 = vmatpush.msra.mxu1 %v426_v14  ;;  %v403_v34 = vld [vmem:[%s1308_s25] sm:$0xff]  ;;  %v504_v37 = vld [vmem:[%s1665_s3 + $0x38] sm:$0xff]  ;;  %v503_v38 = vld [vmem:[%s1665_s3 + $0x30] sm:$0xff] }
  0x5c   : > { %449 = vmatpush.msra.mxu0 %v416_v12  ;;  %521 = vmatpush.msra.mxu2 %v508_v21  ;;  %v505_v36 = vld [vmem:[%s1665_s3 + $0x40] sm:$0xff]  ;;  %v502_v39 = vld [vmem:[%s1665_s3 + $0x28] sm:$0xff]  ;;  %v500_v41 = vld [vmem:[%s1665_s3 + $0x18] sm:$0xff] }
  0x5d   : > { %479 = vmatpush.msra.mxu1 %v425_v17  ;;  %v501_v40 = vld [vmem:[%s1665_s3 + $0x20] sm:$0xff]  ;;  %v499_v42 = vld [vmem:[%s1665_s3 + $0x10] sm:$0xff]  ;;  %v498_v43 = vld [vmem:[%s1665_s3 + $0x8] sm:$0xff] }
  0x5e   : > { %450 = vmatpush.msra.mxu0 %v415_v16  ;;  %522 = vmatpush.msra.mxu2 %v507_v24  ;;  %v497_v44 = vld [vmem:[%s1665_s3] sm:$0xff]  ;;  %v563_v45 = vld [vmem:[%s1667_s5 + $0x78] sm:$0xff]  ;;  %v562_v46 = vld [vmem:[%s1667_s5 + $0x70] sm:$0xff] }
  0x5f   : > { %480 = vmatpush.msra.mxu1 %v424_v20  ;;  %568 = vmatpush.msra.mxu3 %v563_v45  ;;  %v561_v47 = vld [vmem:[%s1667_s5 + $0x68] sm:$0xff]  ;;  %v922_v48 = vld [vmem:[#allocation5] ss:$0 sm:$0xff]  ;;  %v559_v52 = vld [vmem:[%s1667_s5 + $0x58] sm:$0xff] }
  0x60   : > { %451 = vmatpush.msra.mxu0 %v414_v19  ;;  %523 = vmatpush.msra.mxu2 %v506_v27  ;;  %v560_v50 = vld [vmem:[%s1667_s5 + $0x60] sm:$0xff]  ;;  %v558_v54 = vld [vmem:[%s1667_s5 + $0x50] sm:$0xff]  ;;  %v557_v56 = vld [vmem:[%s1667_s5 + $0x48] sm:$0xff] }
  0x61   : > { %481 = vmatpush.msra.mxu1 %v423_v23  ;;  %569 = vmatpush.msra.mxu3 %v562_v46  ;;  %v556_v58 = vld [vmem:[%s1667_s5 + $0x40] sm:$0xff]  ;;  %v555_v6 = vld [vmem:[%s1667_s5 + $0x38] sm:$0xff]  ;;  %v554_v7 = vld [vmem:[%s1667_s5 + $0x30] sm:$0xff] }
  0x62   : > { %452 = vmatpush.msra.mxu0 %v413_v22  ;;  %823 = vmatmul.msk.f32.vlgmr.msra.gmra.mxu1 %vm436_vm0, %v404_v26  ;;  %v553_v8 = vld [vmem:[%s1667_s5 + $0x28] sm:$0xff]  ;;  %v552_v9 = vld [vmem:[%s1667_s5 + $0x20] sm:$0xff]  ;;  %v551_v10 = vld [vmem:[%s1667_s5 + $0x18] sm:$0xff] }
  0x63   : > { %524 = vmatpush.msra.mxu2 %v505_v36  ;;  %570 = vmatpush.msra.mxu3 %v561_v47  ;;  %v550_v11 = vld [vmem:[%s1667_s5 + $0x10] sm:$0xff]  ;;  %v549_v12 = vld [vmem:[%s1667_s5 + $0x8] sm:$0xff]  ;;  %v548_v13 = vld [vmem:[%s1667_s5] sm:$0xff] }
  0x64   : > { %453 = vmatpush.msra.mxu0 %v412_v25  ;;  %v629_v14 = vld [vmem:[%s1669_s7 + $0xf0] sm:$0xff]  ;;  %v630_v15 = vld [vmem:[%s1669_s7 + $0xf8] sm:$0xff]  ;;  %v627_v16 = vld [vmem:[%s1669_s7 + $0xe0] sm:$0xff] }
  0x65   : > { %525 = vmatpush.msra.mxu2 %v504_v37  ;;  %571 = vmatpush.msra.mxu3 %v560_v50  ;;  %v628_v17 = vld [vmem:[%s1669_s7 + $0xe8] sm:$0xff]  ;;  %v625_v18 = vld [vmem:[%s1669_s7 + $0xd0] sm:$0xff]  ;;  %v626_v19 = vld [vmem:[%s1669_s7 + $0xd8] sm:$0xff] }
  0x66   : > { %454 = vmatpush.msra.mxu0 %v411_v28  ;;  %637 = vmatpush.msrb.mxu1 %v629_v14  ;;  %v623_v20 = vld [vmem:[%s1669_s7 + $0xc0] sm:$0xff]  ;;  %v624_v21 = vld [vmem:[%s1669_s7 + $0xc8] sm:$0xff]  ;;  %v621_v23 = vld [vmem:[%s1669_s7 + $0xb0] sm:$0xff] }
  0x67   : > { %526 = vmatpush.msra.mxu2 %v503_v38  ;;  %572 = vmatpush.msra.mxu3 %v559_v52  ;;  %v923_v22 = vld [vmem:[#allocation7] ss:$0 sm:$0xff]  ;;  %v622_v24 = vld [vmem:[%s1669_s7 + $0xb8] sm:$0xff]  ;;  %v620_v27 = vld [vmem:[%s1669_s7 + $0xa8] sm:$0xff] }
  0x68   : > { %455 = vmatpush.msra.mxu0 %v410_v29  ;;  %638 = vmatpush.msrb.mxu1 %v627_v16  ;;  %v619_v26 = vld [vmem:[%s1669_s7 + $0xa0] sm:$0xff]  ;;  %v617_v29 = vld [vmem:[%s1669_s7 + $0x90] sm:$0xff]  ;;  %v612_v46 = vld [vmem:[%s1669_s7 + $0x68] sm:$0xff] }
  0x69   : > { %527 = vmatpush.msra.mxu2 %v502_v39  ;;  %573 = vmatpush.msra.mxu3 %v558_v54  ;;  %v611_v45 = vld [vmem:[%s1669_s7 + $0x60] sm:$0xff]  ;;  %v609_v47 = vld [vmem:[%s1669_s7 + $0x50] sm:$0xff]  ;;  %v608_v50 = vld [vmem:[%s1669_s7 + $0x48] sm:$0xff] }
  0x6a   : > { %456 = vmatpush.msra.mxu0 %v409_v30  ;;  %824 = vmatmul.msk.f32.gmra.mxu1 %vm436_vm0, %v406_v32  ;;  %v618_v30 = vld [vmem:[%s1669_s7 + $0x98] sm:$0xff]  ;;  %v615_v32 = vld [vmem:[%s1669_s7 + $0x80] sm:$0xff]  ;;  %v604_v54 = vld [vmem:[%s1669_s7 + $0x28] sm:$0xff] }
  0x6b   : > { %528 = vmatpush.msra.mxu2 %v501_v40  ;;  %574 = vmatpush.msra.mxu3 %v557_v56  ;;  %v606_v52 = vld [vmem:[%s1669_s7 + $0x38] sm:$0xff] }
  0x6c   : > { %457 = vmatpush.msra.mxu0 %v408_v31  ;;  %639 = vmatpush.msrb.mxu1 %v625_v18  ;;  %v602_v56 = vld [vmem:[%s1669_s7 + $0x18] sm:$0xff] }
  0x6d   : > { %529 = vmatpush.msra.mxu2 %v500_v41  ;;  %575 = vmatpush.msra.mxu3 %v556_v58  ;;  %v600_v58 = vld [vmem:[%s1669_s7 + $0x8] sm:$0xff] }
  0x6e   : > { %458 = vmatpush.msra.mxu0 %v407_v33  ;;  %640 = vmatpush.msrb.mxu1 %v623_v20  ;;  %v616_v33 = vld [vmem:[%s1669_s7 + $0x88] sm:$0xff] }
  0x6f   : > { %459 = vmatmul.f32.vlgmr.msra.gmra.mxu0 %v403_v34  ;;  %530 = vmatpush.msra.mxu2 %v499_v42 }
  0x70   : > { %576 = vmatpush.msra.mxu3 %v555_v6  ;;  %660 = vmatpush.msrb.mxu0 %v630_v15 }
  0x71   : > { %531 = vmatpush.msra.mxu2 %v498_v43  ;;  %641 = vmatpush.msrb.mxu1 %v621_v23  ;;  %v613_v43 = vld [vmem:[%s1669_s7 + $0x70] sm:$0xff] }
  0x72   : > { %577 = vmatpush.msra.mxu3 %v554_v7  ;;  %661 = vmatpush.msrb.mxu0 %v628_v17 }
  0x73   : > { %532 = vmatpush.msra.mxu2 %v497_v44  ;;  %642 = vmatpush.msrb.mxu1 %v619_v26  ;;  %v614_v44 = vld [vmem:[%s1669_s7 + $0x78] sm:$0xff] }
  0x74   : > { %578 = vmatpush.msra.mxu3 %v553_v8  ;;  %662 = vmatpush.msrb.mxu0 %v626_v19  ;;  %v631_v8 = vld [vmem:[%s1670_s8] sm:$0x3] }
  0x75   : > { %842 = vmatpush.msrb.mxu2 %v630_v15  ;;  %643 = vmatpush.msrb.mxu1 %v617_v29 }
  0x76   : > { %579 = vmatpush.msra.mxu3 %v552_v9  ;;  %663 = vmatpush.msrb.mxu0 %v624_v21  ;;  %v633_v9 = vperm.slane %v631_v8, 0 }
  0x77   : > { %462 = vmatmul.f32.gmra.mxu0 %v405_v35  ;;  %843 = vmatpush.msrb.mxu2 %v628_v17 }
  0x78   : > { %580 = vmatpush.msra.mxu3 %v551_v10  ;;  %664 = vmatpush.msrb.mxu0 %v622_v24  ;;  %v634_v10 = vperm.slane %v631_v8, 1 }
  0x79   : > { %844 = vmatpush.msrb.mxu2 %v626_v19  ;;  %644 = vmatpush.msrb.mxu1 %v615_v32 }
  0x7a   : > { %581 = vmatpush.msra.mxu3 %v550_v11  ;;  %665 = vmatpush.msrb.mxu0 %v620_v27 }
  0x7b   : > { %845 = vmatpush.msrb.mxu2 %v624_v21  ;;  %645 = vmatpush.msrb.mxu1 %v613_v43 }
  0x7c   : > { %582 = vmatpush.msra.mxu3 %v549_v12  ;;  %666 = vmatpush.msrb.mxu0 %v618_v30 }
  0x7d   : > { %846 = vmatpush.msrb.mxu2 %v622_v24  ;;  %646 = vmatpush.msrb.mxu1 %v611_v45 }
  0x7e   : > { %583 = vmatpush.msra.mxu3 %v548_v13  ;;  %667 = vmatpush.msrb.mxu0 %v616_v33 }
  0x7f   : > { %847 = vmatpush.msrb.mxu2 %v620_v27  ;;  %647 = vmatpush.msrb.mxu1 %v609_v47 }
  0x80   : > { %668 = vmatpush.msrb.mxu0 %v614_v44 }
  0x81   : > { %848 = vmatpush.msrb.mxu2 %v618_v30 }
  0x82   : > { %669 = vmatpush.msrb.mxu0 %v612_v46 }
  0x83   : > { %849 = vmatpush.msrb.mxu2 %v616_v33 }
  0x85   : > { %850 = vmatpush.msrb.mxu2 %v614_v44 }
  0x87   : > { %851 = vmatpush.msrb.mxu2 %v612_v46 }
  0xdf   : > { %v483_v49 = vpop.f32.mrf.mxu1 }
  0xe7   : > { %v486_v60 = vpop.f32.mrf.mxu1 }
  0xec   : > { %v460_v51 = vpop.f32.mrf.mxu0 }
  0xed   : > { %v461_v53 = vadd.f32 %v922_v48, %v460_v51  ;;  %v605_v51 = vld [vmem:[%s1669_s7 + $0x30] sm:$0xff] }
  0xef   : > { %v484_v55 = vadd.f32 %v483_v49, %v461_v53  ;;  %v607_v49 = vld [vmem:[%s1669_s7 + $0x40] sm:$0xff] }
  0xf0   : > { %648 = vmatpush.msrb.mxu1 %v607_v49  ;;  %v603_v53 = vld [vmem:[%s1669_s7 + $0x20] sm:$0xff] }
  0xf1   : > { %v489_v57 = vmul.f32 0.5, %v484_v55  ;;  %v601_v55 = vld [vmem:[%s1669_s7 + $0x10] sm:$0xff] }
  0xf2   : > { %649 = vmatpush.msrb.mxu1 %v605_v51 }
  0xf3   : > { %925 = vtanh.f32 %v489_v57  ;;  %v599_v57 = vld [vmem:[%s1669_s7] sm:$0xff] }
  0xf4   : > { %v463_v59 = vpop.f32.mrf.mxu0  ;;  %650 = vmatpush.msrb.mxu1 %v603_v53 }
  0xf5   : > { %v464_v61 = vadd.f32 %v922_v48, %v463_v59  ;;  %v610_v48 = vld [vmem:[%s1669_s7 + $0x58] sm:$0xff]  ;;  %v924_v59 = vld [vmem:[%s1668_s6] ss:$0 sm:$0xff] }
  0xf6   : > { %670 = vmatpush.msrb.mxu0 %v610_v48  ;;  %852 = vmatpush.msrb.mxu2 %v610_v48 }
  0xf7   : > { %v487_v62 = vadd.f32 %v486_v60, %v464_v61  ;;  %651 = vmatpush.msrb.mxu1 %v601_v55 }
  0xf8   : > { %671 = vmatpush.msrb.mxu0 %v608_v50  ;;  %853 = vmatpush.msrb.mxu2 %v608_v50 }
  0xf9   : > { %v926_v63 = vpop.eup %925  ;;  %v490_v0 = vmul.f32 0.5, %v487_v62  ;;  %652 = vmatpush.msrb.mxu1 %v599_v57 }
  0xfa   : > { %v493_v1 = vmul.f32 0.5, %v926_v63  ;;  %672 = vmatpush.msrb.mxu0 %v606_v52  ;;  %854 = vmatpush.msrb.mxu2 %v606_v52 }
  0xfb   : > { %927 = vtanh.f32 %v490_v0 }
  0xfc   : > { %v495_v2 = vadd.f32 0.5, %v493_v1  ;;  %673 = vmatpush.msrb.mxu0 %v604_v54  ;;  %855 = vmatpush.msrb.mxu2 %v604_v54 }
  0xfe   : > { %533 = vmatmul.f32.vlgmr.msra.gmra.mxu2 %v495_v2  ;;  %674 = vmatpush.msrb.mxu0 %v602_v56 }
  0xff   : > { %856 = vmatpush.msrb.mxu2 %v602_v56 }
 0x100   : > { %675 = vmatpush.msrb.mxu0 %v600_v58 }
 0x101   : > { %v928_v3 = vpop.eup %927  ;;  %857 = vmatpush.msrb.mxu2 %v600_v58 }
 0x102   : > { %v494_v4 = vmul.f32 0.5, %v928_v3 }
 0x104   : > { %v496_v5 = vadd.f32 0.5, %v494_v4 }
 0x106   : > { %536 = vmatmul.f32.gmra.mxu2 %v496_v5 }
 0x181   : > { %v534_v25 = vpop.f32.mrf.mxu2 }
 0x182   : > { %v535_v28 = vadd.f32 %v923_v22, %v534_v25 }
 0x184   : > { %v540_v31 = vmul.f32 0.5, %v535_v28 }
 0x186   : > { %929 = vtanh.f32 %v540_v31 }
 0x189   : > { %v537_v34 = vpop.f32.mrf.mxu2 }
 0x18a   : > { %v538_v35 = vadd.f32 %v923_v22, %v537_v34 }
 0x18c   : > { %v930_v36 = vpop.eup %929  ;;  %v541_v37 = vmul.f32 0.5, %v538_v35 }
 0x18d   : > { %v544_v38 = vmul.f32 0.5, %v930_v36 }
 0x18e   : > { %931 = vtanh.f32 %v541_v37 }
 0x18f   : > { %v546_v39 = vadd.f32 0.5, %v544_v38 }
 0x191   : > { %584 = vmatmul.f32.vlgmr.msra.gmra.mxu3 %v546_v39 }
 0x194   : > { %v932_v40 = vpop.eup %931 }
 0x195   : > { %v545_v41 = vmul.f32 0.5, %v932_v40 }
 0x197   : > { %v547_v42 = vadd.f32 0.5, %v545_v41 }
 0x199   : > { %587 = vmatmul.f32.gmra.mxu3 %v547_v42 }
 0x214   : > { %v585_v60 = vpop.f32.mrf.mxu3 }
 0x215   : > { %v586_v61 = vadd.f32 %v924_v59, %v585_v60 }
 0x217   : > { %v591_v62 = vmul.f32 0.5, %v586_v61 }
 0x219   : > { %933 = vtanh.f32 %v591_v62 }
 0x21c   : > { %v588_v63 = vpop.f32.mrf.mxu3 }
 0x21d   : > { %v589_v0 = vadd.f32 %v924_v59, %v588_v63 }
 0x21f   : > { %v934_v1 = vpop.eup %933  ;;  %v592_v2 = vmul.f32 0.5, %v589_v0 }
 0x220   : > { %v595_v3 = vmul.f32 0.5, %v934_v1 }
 0x221   : > { %935 = vtanh.f32 %v592_v2 }
 0x222   : > { %v597_v4 = vadd.f32 0.5, %v595_v3 }
 0x224   : > { %653 = vmatmul.f32.vlgmr.msrb.gmra.mxu1 %v597_v4  ;;  %676 = vmatmul.f32.vlgmr.msrb.gmra.mxu0 %v597_v4 }
 0x227   : > { %v936_v5 = vpop.eup %935 }
 0x228   : > { %v596_v6 = vmul.f32 0.5, %v936_v5 }
 0x22a   : > { %v598_v7 = vadd.f32 0.5, %v596_v6 }
 0x22c   : > { %656 = vmatmul.f32.gmra.mxu1 %v598_v7  ;;  %679 = vmatmul.f32.vlgmr.msrb.gmra.mxu2 %v598_v7 }
 0x2a1   : > { %v654_v11 = vpop.f32.mrf.mxu1  ;;  %v677_v12 = vpop.f32.mrf.mxu0 }
 0x2a2   : > { %v655_v13 = vadd.f32 %v654_v11, %v633_v9  ;;  %v678_v14 = vadd.f32 %v677_v12, %v634_v10 }
 0x2a4   : > { %683 = vst [vmem:[%s390_s20] sm:$0xff] %v655_v13 }
 0x2a5   : > { %684 = vst.msk [vmem:[%s390_s20 + $0x8] sm:$0xff] %vm436_vm0, %v678_v14 }
 0x2a9   : > { %v657_v15 = vpop.f32.mrf.mxu1 }
 0x2aa   : > { %v658_v16 = vadd.f32 %v657_v15, %v633_v9 }
 0x2ac   : > { %685 = vst [vmem:[%s390_s20 + $0x10] sm:$0xff] %v658_v16 }
 0x2ae   : > { %694 = sbr.rel (!%p1229_p11) target bundleno = 722 (0x2d2), region = 72 }
 0x2af   : > { %v680_v17 = vpop.f32.mrf.mxu2 }
 0x2b0   : > { %v681_v18 = vadd.f32 %v680_v17, %v634_v10 }
 0x2b2   : > { %686 = vst.msk [vmem:[%s390_s20 + $0x18] sm:$0xff] %vm436_vm0, %v681_v18 }
 0x2b3   : > { %s1703_s17 = smov (!%p697_p6, %s696_s17), 2 }
 0x2b4   : > { %s839_s27 = sshll.u32 %s1703_s17, 4 }
 0x2b5   : > { %s701_s26 = ssub.s32 32, %s839_s27 }
 0x2b6   : > { %s702_s28 = sshll.u32 %s701_s26, 4 }
 0x2b7   : > { %703 = vsyncadd %s688_s4, %s702_s28  ;;  %p1610_p13 = scmp.ne.s32.totalorder %s839_s27, 0  ;;  %s841_s21 = sshll.u32 %s1198_s13, 5 }
 0x2b8   : > { %s707_s23 = scalar_lea.hbm %s1671_s9, %s841_s21  ;;  %s709_s25 = sshll.u32 %s390_s20, 4  ;;  %s1618_s25 = int_to_ptr.vmem [resolvable:$true] %s709_s25 }
 0x2b9   : > { %s711_s29 = sshll.u32 %s707_s23, 4  ;;  %s833_s18 = sshll.u32 %s1703_s17, 8  ;;  %s1620_s29 = int_to_ptr.hbm [resolvable:$true] %s711_s29 }
 0x2ba   : > { %s1036_s19 = sshra.s32 %s1618_s25, 4  ;;  %s1038_s24 = sshrl.u32 %s833_s18, 4  ;;  %s1037_s19 = int_to_ptr.vmem [resolvable:$true] %s1036_s19 }
 0x2bb   : > { %s1043_s2 = scalar_lea.vmem %s1037_s19, %s1038_s24  ;;  %s1124_s13 = smov [#allocation8]  }
 0x2bc   : > { %p1044_p11 = scmp.ne.s32.totalorder %s1037_s19, %s1043_s2  ;;  %s1047_s27 = scalar_lea.vmem %s1124_s13, 64 }
 0x2bd   : > { %p1049_p10 = scmp.lt.s32.totalorder %s1047_s27, %s1043_s2 }
 0x2be   : > { %p1045_p5 = pnand %p1044_p11, %p1610_p13 }
 0x2c0   : > { %p1046_p9 = pneg %p1045_p5 }
 0x2c2   : > { %p1051_p1 = pnand %p1049_p10, %p1046_p9 }
 0x2c4   : > { %1054 = shalt.err (!%p1051_p1)
}
 0x2c5   : > { %s1055_s20 = sshra.s32 %s1620_s29, 4  ;;  %s1066_s14 = scalar_lea.hbm %s1671_s9, 80  ;;  %s1056_s20 = int_to_ptr.hbm [resolvable:$true] %s1055_s20 }
 0x2c6   : > { %s1062_s26 = scalar_lea.hbm %s1056_s20, %s1038_s24  ;;  %p1067_p7 = scmp.lt.s32.totalorder %s1056_s20, %s1671_s9 }
 0x2c7   : > { %p1063_p0 = scmp.ne.s32.totalorder %s1056_s20, %s1062_s26  ;;  %p1068_p8 = scmp.lt.s32.totalorder %s1066_s14, %s1062_s26 }
 0x2c9   : > { %p1064_p2 = pnand %p1063_p0, %p1610_p13  ;;  %p1069_p4 = por %p1068_p8, %p1067_p7 }
 0x2cb   : > { %p1065_p3 = pneg %p1064_p2 }
 0x2cd   : > { %p1070_p12 = pnand %p1069_p4, %p1065_p3 }
 0x2cf   : > { %1073 = shalt.err (!%p1070_p12)
}
 0x2d0   : > { %s1125_s19 = smov 256   ;;  %s1126_s24 = smov 16  }
 0x2d1   : > { %717 = dma.vmem_to_hbm [thread:$0]  (%p1610_p13), %s1618_s25, %s833_s18, %s1620_s29, %s688_s4, %s1125_s19, %s1125_s19, %s1126_s24  }
 0x2d2 PF: > { %p883_p6 = scmp.ge.s32.totalorder %s1117_s12, 2  ;;  %s726_s2 = sand.u32 1, %s1105_s30  }
 0x2d3   : > { %p1694_p11 = scmp.ne.s32.totalorder %s1685_s22, 0  ;;  %s727_s13 = scalar_lea.sflag [#allocation4], %s726_s2 }
 0x2d5   : > { %p876_p5 = pnand %p883_p6, %p1694_p11 }
 0x2d7   : > { %p877_p9 = pneg %p876_p5 }
 0x2d9   : > { %1100 = dma.done.wait (%p877_p9), %s727_s13, 512  }
 0x2da   : > { %1102 = vsyncadd (%p877_p9), %s727_s13, 4294966784  ;;  %s1695_s12 = sld [smem:[#allocation13_spill]]  ;;  %s1698_s30 = smov %s1109_s10 }
 0x2db   : > { %s1696_s27 = sld [smem:[#allocation12_spill]] }
 0x2dc   : > { %s1697_s11 = sld [smem:[#allocation14_spill]] }
 0x2e0   : > { %p23_p10 = scmp.ge.s32.totalorder %s1695_s12, 5  }
 0x2e1   : > { %s1699_s10 = smov %s1696_s27 }
 0x2e2   :  { %25 = sbr.rel (!%p23_p10) target bundleno = 9 (0x9), region = 109 }
 0x2e7   :  { %733 = vsyncpa [#allocation3], 1 }
 0x2e8   :  { %735 = vsyncpa [#allocation3 + $0x1], 1 }
 0x2e9   :  { %736 = vsyncpa [#allocation6], 1 }
 0x2ea   :  { %737 = vsyncpa [#allocation4], 1 }
 0x2eb   :  { %739 = vsyncpa [#allocation4 + $0x1], 1 }

</bundles_post_ra>
